<compile_context>
chip_gen: v6e
topology: v6e:2x2x1
jax: 0.10.0
libtpu: 0.0.40
codegen_flags: <defaults>
</compile_context>

<pallas_src>
import functools

import jax
import jax.numpy as jnp
from jax.experimental import pallas as pl
from jax.experimental.pallas import tpu as pltpu

EPS = 1e-5

WEIGHT_KEYS = ("ln0_g", "ln0_b", "w1", "b1", "w2", "b2",
               "wih", "whh", "bih", "bhh",
               "lnr_g", "lnr_b", "wout", "bout")


def _round_up(x, m):
    return ((x + m - 1) // m) * m


def _layer_norm(x, g, b):
    """Single-pass LayerNorm over the last axis."""
    d = x.shape[-1]
    s1 = jnp.sum(x, axis=-1, keepdims=True)
    s2 = jnp.sum(x * x, axis=-1, keepdims=True)
    mu = s1 * (1.0 / d)
    var = s2 * (1.0 / d) - mu * mu
    return (x - mu) * jax.lax.rsqrt(var + EPS) * g + b


def _mm(x, w):
    """bf16 x bf16 matmul with f32 accumulation on the MXU."""
    return jnp.dot(x.astype(jnp.bfloat16), w.astype(jnp.bfloat16),
                   preferred_element_type=jnp.float32)


def rnn_net_kernel(obs_ref, h0_ref, masks_ref,
                   ln0_g_ref, ln0_b_ref,
                   w1_ref, b1_ref, w2_ref, b2_ref,
                   wih_ref, whh_ref, bih_ref, bhh_ref,
                   lnr_g_ref, lnr_b_ref,
                   wout_ref, bout_ref,
                   act_ref, hfin_ref):
    T = obs_ref.shape[0]
    L = h0_ref.shape[1]

    # Hoist every weight load out of the time loop (VMEM/vreg resident for all T).
    ln0_g, ln0_b = ln0_g_ref[...], ln0_b_ref[...]
    w1, b1 = w1_ref[...], b1_ref[...]
    w2, b2 = w2_ref[...], b2_ref[...]
    wih, whh = wih_ref[...], whh_ref[...]
    bih, bhh = bih_ref[...], bhh_ref[...]
    lnr_g, lnr_b = lnr_g_ref[...], lnr_b_ref[...]
    wout, bout = wout_ref[...], bout_ref[...]

    def step(t, hs):
        # ---- base: feature LayerNorm + MLP (Linear+ReLU x2) ----
        x = _layer_norm(obs_ref[t], ln0_g, ln0_b)                  # [Bt, D]
        h = jnp.maximum(_mm(x, w1) + b1, 0.0)
        feat = jnp.maximum(_mm(h, w2) + b2, 0.0)                   # [Bt, H]

        # ---- GRU step per layer on the mask-reset hidden state ----
        # NOTE: assumes every layer's input dim == H (true for RNNLayer:
        # inputs_dim == outputs_dim == fc_last_hidden).
        m = masks_ref[t]                                           # [Bt, 1]
        x_l = feat
        new_hs = []
        for l in range(L):                                         # static rnn_layer_num
            hp = hs[l] * m
            r = jax.nn.sigmoid(_mm(x_l, wih[l, 0]) + bih[l, 0]
                               + _mm(hp, whh[l, 0]) + bhh[l, 0])
            z = jax.nn.sigmoid(_mm(x_l, wih[l, 1]) + bih[l, 1]
                               + _mm(hp, whh[l, 1]) + bhh[l, 1])
            n = jnp.tanh(_mm(x_l, wih[l, 2]) + bih[l, 2]
                         + r * (_mm(hp, whh[l, 2]) + bhh[l, 2]))
            hn = (1.0 - z) * n + z * hp
            new_hs.append(hn)
            x_l = hn

        # ---- GRU-output LayerNorm + output head (lane-dense, padded to 128) ----
        y = _layer_norm(x_l, lnr_g, lnr_b)
        act_ref[t] = _mm(y, wout) + bout                           # [Bt, A_PAD]
        return tuple(new_hs)

    h0 = h0_ref[...]                                               # [Bt, L, H]
    hs = jax.lax.fori_loop(0, T, step, tuple(h0[:, l, :] for l in range(L)))
    hfin_ref[...] = jnp.stack(hs, axis=1)                          # [Bt, L, H]


@functools.partial(jax.jit, static_argnums=(4, 5))
def _rnn_net_seq_impl(obs, rnn_states, masks, weights, act_dim, block_b):
    T, B, D = obs.shape
    _, L, H = rnn_states.shape
    a_pad = weights[WEIGHT_KEYS.index("wout")].shape[-1]

    bt = min(_round_up(block_b, 8), _round_up(B, 8))   # batch tile (multiple of 8)
    bp = _round_up(B, bt)
    if bp != B:
        pad = bp - B
        obs = jnp.pad(obs, ((0, 0), (0, pad), (0, 0)))
        masks = jnp.pad(masks, ((0, 0), (0, pad), (0, 0)))
        rnn_states = jnp.pad(rnn_states, ((0, pad), (0, 0), (0, 0)))

    grid = (bp // bt,)

    def _resident(arr):
        nd = arr.ndim
        return pl.BlockSpec(arr.shape, lambda i, _n=nd: (0,) * _n)

    in_specs = [
        pl.BlockSpec((T, bt, D), lambda i: (0, i, 0)),     # obs
        pl.BlockSpec((bt, L, H), lambda i: (i, 0, 0)),     # rnn_states (aliased w/ output 1)
        pl.BlockSpec((T, bt, 1), lambda i: (0, i, 0)),     # masks
    ] + [_resident(w) for w in weights]                    # weights stay resident

    out_specs = (
        pl.BlockSpec((T, bt, a_pad), lambda i: (0, i, 0)),  # act (lane-dense slab)
        pl.BlockSpec((bt, L, H), lambda i: (i, 0, 0)),      # final hidden state
    )

    act, h_fin = pl.pallas_call(
        rnn_net_kernel,
        out_shape=(jax.ShapeDtypeStruct((T, bp, a_pad), jnp.float32),
                   jax.ShapeDtypeStruct((bp, L, H), jnp.float32)),
        grid_spec=pltpu.PrefetchScalarGridSpec(
            num_scalar_prefetch=0,
            grid=grid,
            in_specs=in_specs,
            out_specs=out_specs,
        ),
        input_output_aliases={1: 1},   # new hidden state reuses h0's HBM buffer
        compiler_params=pltpu.CompilerParams(
            dimension_semantics=("parallel",)),
    )(obs, rnn_states, masks, *weights)

    return act[:, :B, :act_dim], h_fin[:B]


def rnn_net_forward_seq(obs, rnn_states, masks, params, *, block_b=512):
    """Rollout branch: obs [T,B,D], rnn_states [B,L,H], masks [T,B,1]
       -> (act [T,B,A], new_rnn_states [B,L,H])."""
    weights = tuple(params[k] for k in WEIGHT_KEYS)
    return _rnn_net_seq_impl(obs, rnn_states, masks, weights,
                             int(params["act_dim"]), int(block_b))


def rnn_net_forward(obs, rnn_states, masks, params, *, block_b=512):
    """Single-step branch: obs [B,D], masks [B,1] -> (act [B,A], states [B,L,H])."""
    act, h_fin = rnn_net_forward_seq(obs[None], rnn_states, masks[None],
                                     params, block_b=block_b)
    return act[0], h_fin


def make_params(key, d_obs, h1, h, act_dim, n_layers):
    ks = jax.random.split(key, 10)
    s = 0.1
    a_pad = _round_up(max(act_dim, 1), 128)   # lane-dense output slab width

    def w(k, shape):
        return (s * jax.random.normal(k, shape, jnp.float32)).astype(jnp.bfloat16)

    wout = s * jax.random.normal(ks[8], (h, act_dim), jnp.float32)
    wout = jnp.pad(wout, ((0, 0), (0, a_pad - act_dim))).astype(jnp.bfloat16)
    bout = jnp.pad(s * jax.random.normal(ks[9], (1, act_dim), jnp.float32),
                   ((0, 0), (0, a_pad - act_dim)))

    # TODO(synk): orthogonal/xavier initialization from the PyTorch module is
    # host-side setup; plain scaled-normal weights are used here.
    return {
        "act_dim": act_dim,
        "ln0_g": jnp.ones((1, d_obs), jnp.float32),
        "ln0_b": jnp.zeros((1, d_obs), jnp.float32),
        "w1": w(ks[0], (d_obs, h1)),
        "b1": s * jax.random.normal(ks[1], (1, h1), jnp.float32),
        "w2": w(ks[2], (h1, h)),
        "b2": s * jax.random.normal(ks[3], (1, h), jnp.float32),
        # per-gate GRU weights, PyTorch gate order (r, z, n)
        "wih": w(ks[4], (n_layers, 3, h, h)),
        "whh": w(ks[5], (n_layers, 3, h, h)),
        "bih": s * jax.random.normal(ks[6], (n_layers, 3, 1, h), jnp.float32),
        "bhh": s * jax.random.normal(ks[7], (n_layers, 3, 1, h), jnp.float32),
        "lnr_g": jnp.ones((1, h), jnp.float32),
        "lnr_b": jnp.zeros((1, h), jnp.float32),
        "wout": wout,
        "bout": bout,
    }


def reference_forward_seq(obs, rnn_states, masks, p):
    """Pure-JAX reference (same bf16 matmul inputs) for correctness checks."""
    def ln(x, g, b):
        mu = jnp.mean(x, -1, keepdims=True)
        var = jnp.mean(jnp.square(x - mu), -1, keepdims=True)
        return (x - mu) * jax.lax.rsqrt(var + EPS) * g + b

    def mm(x, w):
        return jnp.dot(x.astype(jnp.bfloat16), w,
                       preferred_element_type=jnp.float32)

    T = obs.shape[0]
    L = rnn_states.shape[1]
    hs = [rnn_states[:, l, :] for l in range(L)]
    acts = []
    for t in range(T):
        x = ln(obs[t], p["ln0_g"], p["ln0_b"])
        h = jnp.maximum(mm(x, p["w1"]) + p["b1"], 0.0)
        feat = jnp.maximum(mm(h, p["w2"]) + p["b2"], 0.0)
        m = masks[t]
        x_l = feat
        for l in range(L):
            hp = hs[l] * m
            r = jax.nn.sigmoid(mm(x_l, p["wih"][l, 0]) + p["bih"][l, 0]
                               + mm(hp, p["whh"][l, 0]) + p["bhh"][l, 0])
            z = jax.nn.sigmoid(mm(x_l, p["wih"][l, 1]) + p["bih"][l, 1]
                               + mm(hp, p["whh"][l, 1]) + p["bhh"][l, 1])
            n = jnp.tanh(mm(x_l, p["wih"][l, 2]) + p["bih"][l, 2]
                         + r * (mm(hp, p["whh"][l, 2]) + p["bhh"][l, 2]))
            hn = (1.0 - z) * n + z * hp
            hs[l] = hn
            x_l = hn
        y = ln(x_l, p["lnr_g"], p["lnr_b"])
        acts.append(mm(y, p["wout"]) + p["bout"])
    act = jnp.stack(acts, 0)[:, :, :p["act_dim"]]
    return act, jnp.stack(hs, 1)


if __name__ == "__main__":
    B, D_OBS, H1, H, ACT_DIM, N_LAYERS, T = 40, 32, 64, 32, 8, 1, 6

    key = jax.random.PRNGKey(0)
    k_obs, k_h, k_m, k_seq, k_p = jax.random.split(key, 5)
    params = make_params(k_p, D_OBS, H1, H, ACT_DIM, N_LAYERS)

    # --- single-step (inference) branch: one batch tile ---
    obs = jax.random.normal(k_obs, (B, D_OBS), jnp.float32)
    states = jax.random.normal(k_h, (B, N_LAYERS, H), jnp.float32)
    masks = jnp.ones((B, 1), jnp.float32).at[0, 0].set(0.0)   # one episode reset

    act, new_states = rnn_net_forward(obs, states, masks, params)
    jax.block_until_ready((act, new_states))
    ref_act, ref_states = reference_forward_seq(obs[None], states, masks[None], params)
    assert jnp.allclose(act, ref_act[0], atol=5e-3, rtol=5e-3)
    assert jnp.allclose(new_states, ref_states, atol=5e-3, rtol=5e-3)

    # --- rollout (seq) branch: batch tiled over a parallel grid (with padding) ---
    obs_seq = jax.random.normal(k_seq, (T, B, D_OBS), jnp.float32)
    masks_seq = (jax.random.uniform(k_m, (T, B, 1)) > 0.15).astype(jnp.float32)

    act_seq, fin_states = rnn_net_forward_seq(obs_seq, states, masks_seq,
                                              params, block_b=16)
    jax.block_until_ready((act_seq, fin_states))
    ref_act_seq, ref_fin = reference_forward_seq(obs_seq, states, masks_seq, params)
    assert jnp.allclose(act_seq, ref_act_seq, atol=5e-3, rtol=5e-3)
    assert jnp.allclose(fin_states, ref_fin, atol=5e-3, rtol=5e-3)

    print("KERNEL_OK")
</pallas_src>

<mosaic_0001>
module attributes {stable_mosaic.version = 11 : i64} {
  func.func @rnn_net_kernel(%arg0: i32, %arg1: memref<1x40x32xf32, #tpu.memory_space<vmem>>, %arg2: memref<40x1x32xf32, #tpu.memory_space<vmem>>, %arg3: memref<1x40x1xf32, #tpu.memory_space<vmem>>, %arg4: memref<1x32xf32, #tpu.memory_space<vmem>>, %arg5: memref<1x32xf32, #tpu.memory_space<vmem>>, %arg6: memref<32x64xbf16, #tpu.memory_space<vmem>>, %arg7: memref<1x64xf32, #tpu.memory_space<vmem>>, %arg8: memref<64x32xbf16, #tpu.memory_space<vmem>>, %arg9: memref<1x32xf32, #tpu.memory_space<vmem>>, %arg10: memref<1x3x32x32xbf16, #tpu.memory_space<vmem>>, %arg11: memref<1x3x32x32xbf16, #tpu.memory_space<vmem>>, %arg12: memref<1x3x1x32xf32, #tpu.memory_space<vmem>>, %arg13: memref<1x3x1x32xf32, #tpu.memory_space<vmem>>, %arg14: memref<1x32xf32, #tpu.memory_space<vmem>>, %arg15: memref<1x32xf32, #tpu.memory_space<vmem>>, %arg16: memref<32x128xbf16, #tpu.memory_space<vmem>>, %arg17: memref<1x128xf32, #tpu.memory_space<vmem>>, %arg18: memref<1x40x128xf32, #tpu.memory_space<vmem>>, %arg19: memref<40x1x32xf32, #tpu.memory_space<vmem>>) attributes {dimension_semantics = [#tpu.dimension_semantics<parallel>], iteration_bounds = array<i64: 1>, scalar_prefetch = 0 : i64, scratch_operands = 0 : i64, tpu.core_type = #tpu.core_type<tc>, window_params = [{transform_indices = @transform_0, window_bounds = array<i64: 1, 40, 32>}, {transform_indices = @transform_1, window_bounds = array<i64: 40, 1, 32>}, {transform_indices = @transform_2, window_bounds = array<i64: 1, 40, 1>}, {pipeline_mode = #tpu.pipeline_mode<synchronous>, transform_indices = @transform_3, window_bounds = array<i64: 1, 32>}, {pipeline_mode = #tpu.pipeline_mode<synchronous>, transform_indices = @transform_4, window_bounds = array<i64: 1, 32>}, {pipeline_mode = #tpu.pipeline_mode<synchronous>, transform_indices = @transform_5, window_bounds = array<i64: 32, 64>}, {pipeline_mode = #tpu.pipeline_mode<synchronous>, transform_indices = @transform_6, window_bounds = array<i64: 1, 64>}, {pipeline_mode = #tpu.pipeline_mode<synchronous>, transform_indices = @transform_7, window_bounds = array<i64: 64, 32>}, {pipeline_mode = #tpu.pipeline_mode<synchronous>, transform_indices = @transform_8, window_bounds = array<i64: 1, 32>}, {pipeline_mode = #tpu.pipeline_mode<synchronous>, transform_indices = @transform_9, window_bounds = array<i64: 1, 3, 32, 32>}, {pipeline_mode = #tpu.pipeline_mode<synchronous>, transform_indices = @transform_10, window_bounds = array<i64: 1, 3, 32, 32>}, {pipeline_mode = #tpu.pipeline_mode<synchronous>, transform_indices = @transform_11, window_bounds = array<i64: 1, 3, 1, 32>}, {pipeline_mode = #tpu.pipeline_mode<synchronous>, transform_indices = @transform_12, window_bounds = array<i64: 1, 3, 1, 32>}, {pipeline_mode = #tpu.pipeline_mode<synchronous>, transform_indices = @transform_13, window_bounds = array<i64: 1, 32>}, {pipeline_mode = #tpu.pipeline_mode<synchronous>, transform_indices = @transform_14, window_bounds = array<i64: 1, 32>}, {pipeline_mode = #tpu.pipeline_mode<synchronous>, transform_indices = @transform_15, window_bounds = array<i64: 32, 128>}, {pipeline_mode = #tpu.pipeline_mode<synchronous>, transform_indices = @transform_16, window_bounds = array<i64: 1, 128>}, {transform_indices = @transform_17, window_bounds = array<i64: 1, 40, 128>}, {transform_indices = @transform_18, window_bounds = array<i64: 40, 1, 32>}]} {
    %c0 = arith.constant 0 : index
    %c0_0 = arith.constant 0 : index
    %0 = vector.load %arg4[%c0, %c0_0] : memref<1x32xf32, #tpu.memory_space<vmem>>, vector<1x32xf32>
    %c0_1 = arith.constant 0 : index
    %c0_2 = arith.constant 0 : index
    %1 = vector.load %arg5[%c0_1, %c0_2] : memref<1x32xf32, #tpu.memory_space<vmem>>, vector<1x32xf32>
    %c0_3 = arith.constant 0 : index
    %c0_4 = arith.constant 0 : index
    %2 = vector.load %arg6[%c0_3, %c0_4] : memref<32x64xbf16, #tpu.memory_space<vmem>>, vector<32x64xbf16>
    %c0_5 = arith.constant 0 : index
    %c0_6 = arith.constant 0 : index
    %3 = vector.load %arg7[%c0_5, %c0_6] : memref<1x64xf32, #tpu.memory_space<vmem>>, vector<1x64xf32>
    %c0_7 = arith.constant 0 : index
    %c0_8 = arith.constant 0 : index
    %4 = vector.load %arg8[%c0_7, %c0_8] : memref<64x32xbf16, #tpu.memory_space<vmem>>, vector<64x32xbf16>
    %c0_9 = arith.constant 0 : index
    %c0_10 = arith.constant 0 : index
    %5 = vector.load %arg9[%c0_9, %c0_10] : memref<1x32xf32, #tpu.memory_space<vmem>>, vector<1x32xf32>
    %c0_11 = arith.constant 0 : index
    %c0_12 = arith.constant 0 : index
    %c0_13 = arith.constant 0 : index
    %c0_14 = arith.constant 0 : index
    %6 = vector.load %arg10[%c0_11, %c0_12, %c0_13, %c0_14] : memref<1x3x32x32xbf16, #tpu.memory_space<vmem>>, vector<1x3x32x32xbf16>
    %c0_15 = arith.constant 0 : index
    %c0_16 = arith.constant 0 : index
    %c0_17 = arith.constant 0 : index
    %c0_18 = arith.constant 0 : index
    %7 = vector.load %arg11[%c0_15, %c0_16, %c0_17, %c0_18] : memref<1x3x32x32xbf16, #tpu.memory_space<vmem>>, vector<1x3x32x32xbf16>
    %c0_19 = arith.constant 0 : index
    %c0_20 = arith.constant 0 : index
    %c0_21 = arith.constant 0 : index
    %c0_22 = arith.constant 0 : index
    %8 = vector.load %arg12[%c0_19, %c0_20, %c0_21, %c0_22] : memref<1x3x1x32xf32, #tpu.memory_space<vmem>>, vector<1x3x1x32xf32>
    %c0_23 = arith.constant 0 : index
    %c0_24 = arith.constant 0 : index
    %c0_25 = arith.constant 0 : index
    %c0_26 = arith.constant 0 : index
    %9 = vector.load %arg13[%c0_23, %c0_24, %c0_25, %c0_26] : memref<1x3x1x32xf32, #tpu.memory_space<vmem>>, vector<1x3x1x32xf32>
    %c0_27 = arith.constant 0 : index
    %c0_28 = arith.constant 0 : index
    %10 = vector.load %arg14[%c0_27, %c0_28] : memref<1x32xf32, #tpu.memory_space<vmem>>, vector<1x32xf32>
    %c0_29 = arith.constant 0 : index
    %c0_30 = arith.constant 0 : index
    %11 = vector.load %arg15[%c0_29, %c0_30] : memref<1x32xf32, #tpu.memory_space<vmem>>, vector<1x32xf32>
    %c0_31 = arith.constant 0 : index
    %c0_32 = arith.constant 0 : index
    %12 = vector.load %arg16[%c0_31, %c0_32] : memref<32x128xbf16, #tpu.memory_space<vmem>>, vector<32x128xbf16>
    %c0_33 = arith.constant 0 : index
    %c0_34 = arith.constant 0 : index
    %13 = vector.load %arg17[%c0_33, %c0_34] : memref<1x128xf32, #tpu.memory_space<vmem>>, vector<1x128xf32>
    %c0_35 = arith.constant 0 : index
    %c0_36 = arith.constant 0 : index
    %c0_37 = arith.constant 0 : index
    %14 = vector.load %arg2[%c0_35, %c0_36, %c0_37] : memref<40x1x32xf32, #tpu.memory_space<vmem>>, vector<40x1x32xf32>
    %15 = vector.shape_cast %14 : vector<40x1x32xf32> to vector<40x32xf32>
    %c0_i32 = arith.constant 0 : i32
    %16 = arith.index_cast %c0_i32 : i32 to index
    %c0_38 = arith.constant 0 : index
    %c0_39 = arith.constant 0 : index
    %17 = vector.load %arg1[%16, %c0_38, %c0_39] : memref<1x40x32xf32, #tpu.memory_space<vmem>>, vector<1x40x32xf32>
    %18 = vector.shape_cast %17 : vector<1x40x32xf32> to vector<40x32xf32>
    %cst = arith.constant dense<0.000000e+00> : vector<40xf32>
    %19 = vector.multi_reduction <add>, %18, %cst [1] : vector<40x32xf32> to vector<40xf32>
    %20 = vector.shape_cast %19 : vector<40xf32> to vector<40x1xf32>
    %21 = arith.mulf %18, %18 : vector<40x32xf32>
    %cst_40 = arith.constant dense<0.000000e+00> : vector<40xf32>
    %22 = vector.multi_reduction <add>, %21, %cst_40 [1] : vector<40x32xf32> to vector<40xf32>
    %23 = vector.shape_cast %22 : vector<40xf32> to vector<40x1xf32>
    %cst_41 = arith.constant 3.125000e-02 : f32
    %24 = vector.broadcast %cst_41 : f32 to vector<40x1xf32>
    %25 = arith.mulf %20, %24 : vector<40x1xf32>
    %cst_42 = arith.constant 3.125000e-02 : f32
    %26 = vector.broadcast %cst_42 : f32 to vector<40x1xf32>
    %27 = arith.mulf %23, %26 : vector<40x1xf32>
    %28 = arith.mulf %25, %25 : vector<40x1xf32>
    %29 = arith.subf %27, %28 : vector<40x1xf32>
    %30 = vector.broadcast %25 : vector<40x1xf32> to vector<40x32xf32>
    %31 = arith.subf %18, %30 : vector<40x32xf32>
    %cst_43 = arith.constant 9.99999974E-6 : f32
    %32 = vector.broadcast %cst_43 : f32 to vector<40x1xf32>
    %33 = arith.addf %29, %32 : vector<40x1xf32>
    %34 = math.rsqrt %33 : vector<40x1xf32>
    %35 = vector.broadcast %34 : vector<40x1xf32> to vector<40x32xf32>
    %36 = arith.mulf %31, %35 : vector<40x32xf32>
    %37 = vector.broadcast %0 : vector<1x32xf32> to vector<40x32xf32>
    %38 = arith.mulf %36, %37 : vector<40x32xf32>
    %39 = vector.broadcast %1 : vector<1x32xf32> to vector<40x32xf32>
    %40 = arith.addf %38, %39 : vector<40x32xf32>
    %41 = arith.truncf %40 : vector<40x32xf32> to vector<40x32xbf16>
    %cst_44 = arith.constant dense<0.000000e+00> : vector<40x64xf32>
    %42 = tpu.matmul %41, %2, %cst_44 {dimension_numbers = #tpu.dot_dimension_numbers<[1], [0], [0], [1], [0, 0, 1, 1], [], []>} : vector<40x32xbf16>, vector<32x64xbf16>, vector<40x64xf32> -> vector<40x64xf32>
    %43 = vector.broadcast %3 : vector<1x64xf32> to vector<40x64xf32>
    %44 = arith.addf %42, %43 : vector<40x64xf32>
    %cst_45 = arith.constant 0.000000e+00 : f32
    %45 = vector.broadcast %cst_45 : f32 to vector<40x64xf32>
    %46 = arith.maximumf %44, %45 : vector<40x64xf32>
    %47 = arith.truncf %46 : vector<40x64xf32> to vector<40x64xbf16>
    %cst_46 = arith.constant dense<0.000000e+00> : vector<40x32xf32>
    %48 = tpu.matmul %47, %4, %cst_46 {dimension_numbers = #tpu.dot_dimension_numbers<[1], [0], [0], [1], [0, 0, 1, 1], [], []>} : vector<40x64xbf16>, vector<64x32xbf16>, vector<40x32xf32> -> vector<40x32xf32>
    %49 = vector.broadcast %5 : vector<1x32xf32> to vector<40x32xf32>
    %50 = arith.addf %48, %49 : vector<40x32xf32>
    %cst_47 = arith.constant 0.000000e+00 : f32
    %51 = vector.broadcast %cst_47 : f32 to vector<40x32xf32>
    %52 = arith.maximumf %50, %51 : vector<40x32xf32>
    %53 = arith.index_cast %c0_i32 : i32 to index
    %c0_48 = arith.constant 0 : index
    %c0_49 = arith.constant 0 : index
    %54 = vector.load %arg3[%53, %c0_48, %c0_49] : memref<1x40x1xf32, #tpu.memory_space<vmem>>, vector<1x40x1xf32>
    %55 = vector.shape_cast %54 : vector<1x40x1xf32> to vector<40x1xf32>
    %56 = vector.broadcast %55 : vector<40x1xf32> to vector<40x32xf32>
    %57 = arith.mulf %15, %56 : vector<40x32xf32>
    %58 = vector.extract_strided_slice %6 {offsets = [0, 0, 0, 0], sizes = [1, 1, 32, 32], strides = [1, 1, 1, 1]} : vector<1x3x32x32xbf16> to vector<1x1x32x32xbf16>
    %59 = vector.shape_cast %58 : vector<1x1x32x32xbf16> to vector<32x32xbf16>
    %60 = arith.truncf %52 : vector<40x32xf32> to vector<40x32xbf16>
    %cst_50 = arith.constant dense<0.000000e+00> : vector<40x32xf32>
    %61 = tpu.matmul %60, %59, %cst_50 {dimension_numbers = #tpu.dot_dimension_numbers<[1], [0], [0], [1], [0, 0, 1, 1], [], []>} : vector<40x32xbf16>, vector<32x32xbf16>, vector<40x32xf32> -> vector<40x32xf32>
    %62 = vector.extract_strided_slice %8 {offsets = [0, 0, 0, 0], sizes = [1, 1, 1, 32], strides = [1, 1, 1, 1]} : vector<1x3x1x32xf32> to vector<1x1x1x32xf32>
    %63 = vector.shape_cast %62 : vector<1x1x1x32xf32> to vector<1x32xf32>
    %64 = vector.broadcast %63 : vector<1x32xf32> to vector<40x32xf32>
    %65 = arith.addf %61, %64 : vector<40x32xf32>
    %66 = vector.extract_strided_slice %7 {offsets = [0, 0, 0, 0], sizes = [1, 1, 32, 32], strides = [1, 1, 1, 1]} : vector<1x3x32x32xbf16> to vector<1x1x32x32xbf16>
    %67 = vector.shape_cast %66 : vector<1x1x32x32xbf16> to vector<32x32xbf16>
    %68 = arith.truncf %57 : vector<40x32xf32> to vector<40x32xbf16>
    %cst_51 = arith.constant dense<0.000000e+00> : vector<40x32xf32>
    %69 = tpu.matmul %68, %67, %cst_51 {dimension_numbers = #tpu.dot_dimension_numbers<[1], [0], [0], [1], [0, 0, 1, 1], [], []>} : vector<40x32xbf16>, vector<32x32xbf16>, vector<40x32xf32> -> vector<40x32xf32>
    %70 = arith.addf %65, %69 : vector<40x32xf32>
    %71 = vector.extract_strided_slice %9 {offsets = [0, 0, 0, 0], sizes = [1, 1, 1, 32], strides = [1, 1, 1, 1]} : vector<1x3x1x32xf32> to vector<1x1x1x32xf32>
    %72 = vector.shape_cast %71 : vector<1x1x1x32xf32> to vector<1x32xf32>
    %73 = vector.broadcast %72 : vector<1x32xf32> to vector<40x32xf32>
    %74 = arith.addf %70, %73 : vector<40x32xf32>
    %75 = arith.negf %74 : vector<40x32xf32>
    %76 = math.exp %75 : vector<40x32xf32>
    %cst_52 = arith.constant 1.000000e+00 : f32
    %77 = vector.broadcast %cst_52 : f32 to vector<40x32xf32>
    %78 = arith.addf %77, %76 : vector<40x32xf32>
    %79 = arith.divf %77, %78 : vector<40x32xf32>
    %80 = vector.extract_strided_slice %6 {offsets = [0, 1, 0, 0], sizes = [1, 1, 32, 32], strides = [1, 1, 1, 1]} : vector<1x3x32x32xbf16> to vector<1x1x32x32xbf16>
    %81 = vector.shape_cast %80 : vector<1x1x32x32xbf16> to vector<32x32xbf16>
    %82 = arith.truncf %52 : vector<40x32xf32> to vector<40x32xbf16>
    %cst_53 = arith.constant dense<0.000000e+00> : vector<40x32xf32>
    %83 = tpu.matmul %82, %81, %cst_53 {dimension_numbers = #tpu.dot_dimension_numbers<[1], [0], [0], [1], [0, 0, 1, 1], [], []>} : vector<40x32xbf16>, vector<32x32xbf16>, vector<40x32xf32> -> vector<40x32xf32>
    %84 = vector.extract_strided_slice %8 {offsets = [0, 1, 0, 0], sizes = [1, 1, 1, 32], strides = [1, 1, 1, 1]} : vector<1x3x1x32xf32> to vector<1x1x1x32xf32>
    %85 = vector.shape_cast %84 : vector<1x1x1x32xf32> to vector<1x32xf32>
    %86 = vector.broadcast %85 : vector<1x32xf32> to vector<40x32xf32>
    %87 = arith.addf %83, %86 : vector<40x32xf32>
    %88 = vector.extract_strided_slice %7 {offsets = [0, 1, 0, 0], sizes = [1, 1, 32, 32], strides = [1, 1, 1, 1]} : vector<1x3x32x32xbf16> to vector<1x1x32x32xbf16>
    %89 = vector.shape_cast %88 : vector<1x1x32x32xbf16> to vector<32x32xbf16>
    %90 = arith.truncf %57 : vector<40x32xf32> to vector<40x32xbf16>
    %cst_54 = arith.constant dense<0.000000e+00> : vector<40x32xf32>
    %91 = tpu.matmul %90, %89, %cst_54 {dimension_numbers = #tpu.dot_dimension_numbers<[1], [0], [0], [1], [0, 0, 1, 1], [], []>} : vector<40x32xbf16>, vector<32x32xbf16>, vector<40x32xf32> -> vector<40x32xf32>
    %92 = arith.addf %87, %91 : vector<40x32xf32>
    %93 = vector.extract_strided_slice %9 {offsets = [0, 1, 0, 0], sizes = [1, 1, 1, 32], strides = [1, 1, 1, 1]} : vector<1x3x1x32xf32> to vector<1x1x1x32xf32>
    %94 = vector.shape_cast %93 : vector<1x1x1x32xf32> to vector<1x32xf32>
    %95 = vector.broadcast %94 : vector<1x32xf32> to vector<40x32xf32>
    %96 = arith.addf %92, %95 : vector<40x32xf32>
    %97 = arith.negf %96 : vector<40x32xf32>
    %98 = math.exp %97 : vector<40x32xf32>
    %cst_55 = arith.constant 1.000000e+00 : f32
    %99 = vector.broadcast %cst_55 : f32 to vector<40x32xf32>
    %100 = arith.addf %99, %98 : vector<40x32xf32>
    %101 = arith.divf %99, %100 : vector<40x32xf32>
    %102 = vector.extract_strided_slice %6 {offsets = [0, 2, 0, 0], sizes = [1, 1, 32, 32], strides = [1, 1, 1, 1]} : vector<1x3x32x32xbf16> to vector<1x1x32x32xbf16>
    %103 = vector.shape_cast %102 : vector<1x1x32x32xbf16> to vector<32x32xbf16>
    %104 = arith.truncf %52 : vector<40x32xf32> to vector<40x32xbf16>
    %cst_56 = arith.constant dense<0.000000e+00> : vector<40x32xf32>
    %105 = tpu.matmul %104, %103, %cst_56 {dimension_numbers = #tpu.dot_dimension_numbers<[1], [0], [0], [1], [0, 0, 1, 1], [], []>} : vector<40x32xbf16>, vector<32x32xbf16>, vector<40x32xf32> -> vector<40x32xf32>
    %106 = vector.extract_strided_slice %8 {offsets = [0, 2, 0, 0], sizes = [1, 1, 1, 32], strides = [1, 1, 1, 1]} : vector<1x3x1x32xf32> to vector<1x1x1x32xf32>
    %107 = vector.shape_cast %106 : vector<1x1x1x32xf32> to vector<1x32xf32>
    %108 = vector.broadcast %107 : vector<1x32xf32> to vector<40x32xf32>
    %109 = arith.addf %105, %108 : vector<40x32xf32>
    %110 = vector.extract_strided_slice %7 {offsets = [0, 2, 0, 0], sizes = [1, 1, 32, 32], strides = [1, 1, 1, 1]} : vector<1x3x32x32xbf16> to vector<1x1x32x32xbf16>
    %111 = vector.shape_cast %110 : vector<1x1x32x32xbf16> to vector<32x32xbf16>
    %112 = arith.truncf %57 : vector<40x32xf32> to vector<40x32xbf16>
    %cst_57 = arith.constant dense<0.000000e+00> : vector<40x32xf32>
    %113 = tpu.matmul %112, %111, %cst_57 {dimension_numbers = #tpu.dot_dimension_numbers<[1], [0], [0], [1], [0, 0, 1, 1], [], []>} : vector<40x32xbf16>, vector<32x32xbf16>, vector<40x32xf32> -> vector<40x32xf32>
    %114 = vector.extract_strided_slice %9 {offsets = [0, 2, 0, 0], sizes = [1, 1, 1, 32], strides = [1, 1, 1, 1]} : vector<1x3x1x32xf32> to vector<1x1x1x32xf32>
    %115 = vector.shape_cast %114 : vector<1x1x1x32xf32> to vector<1x32xf32>
    %116 = vector.broadcast %115 : vector<1x32xf32> to vector<40x32xf32>
    %117 = arith.addf %113, %116 : vector<40x32xf32>
    %118 = arith.mulf %79, %117 : vector<40x32xf32>
    %119 = arith.addf %109, %118 : vector<40x32xf32>
    %120 = math.tanh %119 : vector<40x32xf32>
    %cst_58 = arith.constant 1.000000e+00 : f32
    %121 = vector.broadcast %cst_58 : f32 to vector<40x32xf32>
    %122 = arith.subf %121, %101 : vector<40x32xf32>
    %123 = arith.mulf %122, %120 : vector<40x32xf32>
    %124 = arith.mulf %101, %57 : vector<40x32xf32>
    %125 = arith.addf %123, %124 : vector<40x32xf32>
    %cst_59 = arith.constant dense<0.000000e+00> : vector<40xf32>
    %126 = vector.multi_reduction <add>, %125, %cst_59 [1] : vector<40x32xf32> to vector<40xf32>
    %127 = vector.shape_cast %126 : vector<40xf32> to vector<40x1xf32>
    %128 = arith.mulf %125, %125 : vector<40x32xf32>
    %cst_60 = arith.constant dense<0.000000e+00> : vector<40xf32>
    %129 = vector.multi_reduction <add>, %128, %cst_60 [1] : vector<40x32xf32> to vector<40xf32>
    %130 = vector.shape_cast %129 : vector<40xf32> to vector<40x1xf32>
    %cst_61 = arith.constant 3.125000e-02 : f32
    %131 = vector.broadcast %cst_61 : f32 to vector<40x1xf32>
    %132 = arith.mulf %127, %131 : vector<40x1xf32>
    %cst_62 = arith.constant 3.125000e-02 : f32
    %133 = vector.broadcast %cst_62 : f32 to vector<40x1xf32>
    %134 = arith.mulf %130, %133 : vector<40x1xf32>
    %135 = arith.mulf %132, %132 : vector<40x1xf32>
    %136 = arith.subf %134, %135 : vector<40x1xf32>
    %137 = vector.broadcast %132 : vector<40x1xf32> to vector<40x32xf32>
    %138 = arith.subf %125, %137 : vector<40x32xf32>
    %cst_63 = arith.constant 9.99999974E-6 : f32
    %139 = vector.broadcast %cst_63 : f32 to vector<40x1xf32>
    %140 = arith.addf %136, %139 : vector<40x1xf32>
    %141 = math.rsqrt %140 : vector<40x1xf32>
    %142 = vector.broadcast %141 : vector<40x1xf32> to vector<40x32xf32>
    %143 = arith.mulf %138, %142 : vector<40x32xf32>
    %144 = vector.broadcast %10 : vector<1x32xf32> to vector<40x32xf32>
    %145 = arith.mulf %143, %144 : vector<40x32xf32>
    %146 = vector.broadcast %11 : vector<1x32xf32> to vector<40x32xf32>
    %147 = arith.addf %145, %146 : vector<40x32xf32>
    %148 = arith.truncf %147 : vector<40x32xf32> to vector<40x32xbf16>
    %cst_64 = arith.constant dense<0.000000e+00> : vector<40x128xf32>
    %149 = tpu.matmul %148, %12, %cst_64 {dimension_numbers = #tpu.dot_dimension_numbers<[1], [0], [0], [1], [0, 0, 1, 1], [], []>} : vector<40x32xbf16>, vector<32x128xbf16>, vector<40x128xf32> -> vector<40x128xf32>
    %150 = vector.broadcast %13 : vector<1x128xf32> to vector<40x128xf32>
    %151 = arith.addf %149, %150 : vector<40x128xf32>
    %152 = arith.index_cast %c0_i32 : i32 to index
    %c0_65 = arith.constant 0 : index
    %c0_66 = arith.constant 0 : index
    %153 = vector.load %arg18[%152, %c0_65, %c0_66] : memref<1x40x128xf32, #tpu.memory_space<vmem>>, vector<1x40x128xf32>
    %154 = vector.shape_cast %153 : vector<1x40x128xf32> to vector<40x128xf32>
    %155 = vector.shape_cast %151 : vector<40x128xf32> to vector<1x40x128xf32>
    tpu.vector_store %arg18[%152, %c0_65, %c0_66], %155 {strides = array<i32>} : memref<1x40x128xf32, #tpu.memory_space<vmem>>, vector<1x40x128xf32>,
    %c1_i32 = arith.constant 1 : i32
    %156 = vector.shape_cast %125 : vector<40x32xf32> to vector<40x1x32xf32>
    %c0_67 = arith.constant 0 : index
    %c0_68 = arith.constant 0 : index
    %c0_69 = arith.constant 0 : index
    %157 = vector.load %arg19[%c0_67, %c0_68, %c0_69] : memref<40x1x32xf32, #tpu.memory_space<vmem>>, vector<40x1x32xf32>
    tpu.vector_store %arg19[%c0_67, %c0_68, %c0_69], %156 {strides = array<i32>} : memref<40x1x32xf32, #tpu.memory_space<vmem>>, vector<40x1x32xf32>,
    return
  }
  func.func @transform_0(%arg0: i32) -> (i32, i32, i32) {
    %c0_i32 = arith.constant 0 : i32
    %c0_i32_0 = arith.constant 0 : i32
    %c0_i32_1 = arith.constant 0 : i32
    return %c0_i32, %arg0, %c0_i32_0 : i32, i32, i32
  }
  func.func @transform_1(%arg0: i32) -> (i32, i32, i32) {
    %c0_i32 = arith.constant 0 : i32
    %c0_i32_0 = arith.constant 0 : i32
    %c0_i32_1 = arith.constant 0 : i32
    return %arg0, %c0_i32, %c0_i32_0 : i32, i32, i32
  }
  func.func @transform_2(%arg0: i32) -> (i32, i32, i32) {
    %c0_i32 = arith.constant 0 : i32
    %c0_i32_0 = arith.constant 0 : i32
    %c0_i32_1 = arith.constant 0 : i32
    return %c0_i32, %arg0, %c0_i32_0 : i32, i32, i32
  }
  func.func @transform_3(%arg0: i32) -> (i32, i32) {
    %c0_i32 = arith.constant 0 : i32
    %c0_i32_0 = arith.constant 0 : i32
    %c0_i32_1 = arith.constant 0 : i32
    return %c0_i32, %c0_i32_0 : i32, i32
  }
  func.func @transform_4(%arg0: i32) -> (i32, i32) {
    %c0_i32 = arith.constant 0 : i32
    %c0_i32_0 = arith.constant 0 : i32
    %c0_i32_1 = arith.constant 0 : i32
    return %c0_i32, %c0_i32_0 : i32, i32
  }
  func.func @transform_5(%arg0: i32) -> (i32, i32) {
    %c0_i32 = arith.constant 0 : i32
    %c0_i32_0 = arith.constant 0 : i32
    %c0_i32_1 = arith.constant 0 : i32
    return %c0_i32, %c0_i32_0 : i32, i32
  }
  func.func @transform_6(%arg0: i32) -> (i32, i32) {
    %c0_i32 = arith.constant 0 : i32
    %c0_i32_0 = arith.constant 0 : i32
    %c0_i32_1 = arith.constant 0 : i32
    return %c0_i32, %c0_i32_0 : i32, i32
  }
  func.func @transform_7(%arg0: i32) -> (i32, i32) {
    %c0_i32 = arith.constant 0 : i32
    %c0_i32_0 = arith.constant 0 : i32
    %c0_i32_1 = arith.constant 0 : i32
    return %c0_i32, %c0_i32_0 : i32, i32
  }
  func.func @transform_8(%arg0: i32) -> (i32, i32) {
    %c0_i32 = arith.constant 0 : i32
    %c0_i32_0 = arith.constant 0 : i32
    %c0_i32_1 = arith.constant 0 : i32
    return %c0_i32, %c0_i32_0 : i32, i32
  }
  func.func @transform_9(%arg0: i32) -> (i32, i32, i32, i32) {
    %c0_i32 = arith.constant 0 : i32
    %c0_i32_0 = arith.constant 0 : i32
    %c0_i32_1 = arith.constant 0 : i32
    %c0_i32_2 = arith.constant 0 : i32
    %c0_i32_3 = arith.constant 0 : i32
    return %c0_i32, %c0_i32_0, %c0_i32_1, %c0_i32_2 : i32, i32, i32, i32
  }
  func.func @transform_10(%arg0: i32) -> (i32, i32, i32, i32) {
    %c0_i32 = arith.constant 0 : i32
    %c0_i32_0 = arith.constant 0 : i32
    %c0_i32_1 = arith.constant 0 : i32
    %c0_i32_2 = arith.constant 0 : i32
    %c0_i32_3 = arith.constant 0 : i32
    return %c0_i32, %c0_i32_0, %c0_i32_1, %c0_i32_2 : i32, i32, i32, i32
  }
  func.func @transform_11(%arg0: i32) -> (i32, i32, i32, i32) {
    %c0_i32 = arith.constant 0 : i32
    %c0_i32_0 = arith.constant 0 : i32
    %c0_i32_1 = arith.constant 0 : i32
    %c0_i32_2 = arith.constant 0 : i32
    %c0_i32_3 = arith.constant 0 : i32
    return %c0_i32, %c0_i32_0, %c0_i32_1, %c0_i32_2 : i32, i32, i32, i32
  }
  func.func @transform_12(%arg0: i32) -> (i32, i32, i32, i32) {
    %c0_i32 = arith.constant 0 : i32
    %c0_i32_0 = arith.constant 0 : i32
    %c0_i32_1 = arith.constant 0 : i32
    %c0_i32_2 = arith.constant 0 : i32
    %c0_i32_3 = arith.constant 0 : i32
    return %c0_i32, %c0_i32_0, %c0_i32_1, %c0_i32_2 : i32, i32, i32, i32
  }
  func.func @transform_13(%arg0: i32) -> (i32, i32) {
    %c0_i32 = arith.constant 0 : i32
    %c0_i32_0 = arith.constant 0 : i32
    %c0_i32_1 = arith.constant 0 : i32
    return %c0_i32, %c0_i32_0 : i32, i32
  }
  func.func @transform_14(%arg0: i32) -> (i32, i32) {
    %c0_i32 = arith.constant 0 : i32
    %c0_i32_0 = arith.constant 0 : i32
    %c0_i32_1 = arith.constant 0 : i32
    return %c0_i32, %c0_i32_0 : i32, i32
  }
  func.func @transform_15(%arg0: i32) -> (i32, i32) {
    %c0_i32 = arith.constant 0 : i32
    %c0_i32_0 = arith.constant 0 : i32
    %c0_i32_1 = arith.constant 0 : i32
    return %c0_i32, %c0_i32_0 : i32, i32
  }
  func.func @transform_16(%arg0: i32) -> (i32, i32) {
    %c0_i32 = arith.constant 0 : i32
    %c0_i32_0 = arith.constant 0 : i32
    %c0_i32_1 = arith.constant 0 : i32
    return %c0_i32, %c0_i32_0 : i32, i32
  }
  func.func @transform_17(%arg0: i32) -> (i32, i32, i32) {
    %c0_i32 = arith.constant 0 : i32
    %c0_i32_0 = arith.constant 0 : i32
    %c0_i32_1 = arith.constant 0 : i32
    return %c0_i32, %arg0, %c0_i32_0 : i32, i32, i32
  }
  func.func @transform_18(%arg0: i32) -> (i32, i32, i32) {
    %c0_i32 = arith.constant 0 : i32
    %c0_i32_0 = arith.constant 0 : i32
    %c0_i32_1 = arith.constant 0 : i32
    return %arg0, %c0_i32, %c0_i32_0 : i32, i32, i32
  }
}

</mosaic_0001>

<bundles_post_ra>
// kernel: _rnn_net_seq_impl.1
= control target key start
LH: loop header
LB: loop body
LE: loop exit
PB: predicated region body
PF: predicated region fallthrough
CT: control target
= control target key end

     0   :  { %vm157_vm0 = vcmask 261120   ;;  %v3983_v20 = vmov 0.0   ;;  %vm2678_vm1 = vmmov 0   ;;  %v2679_v23 = vmov 0   ;;  %s3961_s0 = inlined_call_operand.vmem [shape: f32[1,40,32], index: 0, kind: input, shape index: {}]   ;;  %s3962_s5 = inlined_call_operand.vmem [shape: bf16[32,64], index: 5, kind: input, shape index: {}]   ;;  %s3963_s2 = inlined_call_operand.vmem [shape: f32[1,40,1], index: 2, kind: input, shape index: {}]   ;;  %s3964_s7 = inlined_call_operand.vmem [shape: bf16[64,32], index: 7, kind: input, shape index: {}]   ;;  %s3965_s3 = inlined_call_operand.vmem [shape: f32[1,32], index: 3, kind: input, shape index: {}]   ;;  %s3966_s4 = inlined_call_operand.vmem [shape: f32[1,32], index: 4, kind: input, shape index: {}]   ;;  %s3967_s1 = inlined_call_operand.vmem [shape: f32[40,1,32], index: 1, kind: input, shape index: {}, may-alias: {1,18}]   ;;  %s3968_s10 = inlined_call_operand.vmem [shape: bf16[1,3,32,32], index: 10, kind: input, shape index: {}]   ;;  %s3969_s6 = inlined_call_operand.vmem [shape: f32[1,64], index: 6, kind: input, shape index: {}]   ;;  %s3970_s9 = inlined_call_operand.vmem [shape: bf16[1,3,32,32], index: 9, kind: input, shape index: {}]   ;;  %s3971_s8 = inlined_call_operand.vmem [shape: f32[1,32], index: 8, kind: input, shape index: {}]   ;;  %s3972_s11 = inlined_call_operand.vmem [shape: f32[1,3,1,32], index: 11, kind: input, shape index: {}]   ;;  %s3973_s12 = inlined_call_operand.vmem [shape: f32[1,3,1,32], index: 12, kind: input, shape index: {}]   ;;  %s3974_s18 = inlined_call_operand.vmem [shape: f32[40,1,32], index: 18, kind: output, shape index: {1}, may-alias: {1,18}]   ;;  %s3975_s15 = inlined_call_operand.vmem [shape: bf16[32,128], index: 15, kind: input, shape index: {}]   ;;  %s3976_s13 = inlined_call_operand.vmem [shape: f32[1,32], index: 13, kind: input, shape index: {}]   ;;  %s3977_s14 = inlined_call_operand.vmem [shape: f32[1,32], index: 14, kind: input, shape index: {}]   ;;  %s3978_s16 = inlined_call_operand.vmem [shape: f32[1,128], index: 16, kind: input, shape index: {}]   ;;  %s3979_s17 = inlined_call_operand.vmem [shape: f32[1,40,128], index: 17, kind: output, shape index: {0}]  }
   0x1   :  { %3998 = sst [smem:[#allocation17_spill]] %s3961_s0  ;;  %2429 = vmatprep.subr.bf16.mxu0 %v3983_v20  ;;  %2433 = vmatprep.mubr.msk.bf16.mxu0 %vm2678_vm1, %v3983_v20  ;;  %vm922_vm2 = vcmask 1041409   ;;  %vm925_vm3 = vcmask 1042434   ;;  %vm928_vm4 = vcmask 1043459   ;;  %vm931_vm5 = vcmask 1044484  }
   0x2   :  { %3999 = sst [smem:[#allocation18_spill]] %s3962_s5  ;;  %2577 = vmatprep.subr.bf16.mxu1 %v3983_v20  ;;  %2437 = vmatprep.mubr.msk.bf16.mxu1 %vm2678_vm1, %v3983_v20  ;;  %vm934_vm6 = vcmask 1045509   ;;  %vm937_vm7 = vcmask 1046534   ;;  %vm940_vm8 = vcmask 1047559   ;;  %vm379_vm9 = vcmask 523264  }
   0x3   :  { %4000 = sst [smem:[#allocation19_spill]] %s3963_s2  ;;  %2586 = vset.pattern.permute.xlu1 %v2679_v23  ;;  %2585 = vset.pattern.permute.xlu0 %v2679_v23  ;;  %vm2263_vm10 = vcmask 253952  }
   0x4   :  { %s4001_s29 = sld [smem:[#allocation17_spill]] }
   0x5   :  { %s4002_s25 = sld [smem:[#allocation18_spill]] }
   0x6   :  { %s4003_s30 = sld [smem:[#allocation19_spill]] }
   0xa   :  { %v2779_v0 = vld [vmem:[%s4001_s29] sm:$0xff]  ;;  %v2784_v1 = vld [vmem:[%s4001_s29 + $0x8] sm:$0xff]  ;;  %v2798_v7 = vld [vmem:[%s4001_s29 + $0x10] sm:$0xff] }
   0xb   :  { %v158_v2 = vsel %vm157_vm0, %v2779_v0, 0.0  ;;  %v173_v3 = vmul.f32 %v2779_v0, %v2779_v0  ;;  %v174_v4 = vmul.f32 %v2784_v1, %v2784_v1  ;;  %v161_v6 = vsel %vm157_vm0, %v2784_v1, 0.0  ;;  %v2804_v9 = vld [vmem:[%s4001_s29 + $0x18] sm:$0xff]  ;;  %v2817_v14 = vld [vmem:[%s4001_s29 + $0x20] sm:$0xff]  ;;  %v2587_v21 = vld [vmem:[%s4002_s25 + $0x8] sm:$0xff]  }
   0xc   :  { %159 = vadd.xlane.f32.xlu0 %v158_v2  ;;  %v164_v10 = vsel %vm157_vm0, %v2798_v7, 0.0  ;;  %v175_v11 = vmul.f32 %v2798_v7, %v2798_v7  ;;  %v167_v12 = vsel %vm157_vm0, %v2804_v9, 0.0  ;;  %v176_v13 = vmul.f32 %v2804_v9, %v2804_v9  ;;  %2430 = vmatpush3.bf16.msra.mxu0 %v2587_v21  ;;  %v2588_v22 = vld [vmem:[%s4002_s25] sm:$0xff]   ;;  %v451_v24 = vld [vmem:[%s4003_s30 + $0x8] sm:$0xff]  ;;  %v452_v26 = vld [vmem:[%s4003_s30 + $0x10] sm:$0xff] }
   0xd   :  { %v178_v5 = vsel %vm157_vm0, %v173_v3, 0.0  ;;  %v181_v8 = vsel %vm157_vm0, %v174_v4, 0.0  ;;  %v177_v17 = vmul.f32 %v2817_v14, %v2817_v14  ;;  %v170_v18 = vsel %vm157_vm0, %v2817_v14, 0.0  ;;  %2579 = vmatpush3.bf16.msra.mxu1 %v2587_v21  ;;  %2431 = vmatprep.subr.bf16.mxu0 %v3983_v20  ;;  %v450_v25 = vld [vmem:[%s4003_s30] sm:$0xff] }
   0xe   :  { %179 = vadd.xlane.f32.xlu1 %v178_v5  ;;  %v184_v15 = vsel %vm157_vm0, %v175_v11, 0.0  ;;  %v187_v16 = vsel %vm157_vm0, %v176_v13, 0.0  ;;  %2578 = vmatprep.subr.bf16.mxu1 %v3983_v20  ;;  %v2312_v3 = vld [vmem:[%s3965_s3] ss:$0 sm:$0xff] }
   0xf   :  { %v190_v19 = vsel %vm157_vm0, %v177_v17, 0.0 }
  0x10   :  { %162 = vadd.xlane.f32.xlu0 %v161_v6  ;;  %2432 = vmatpush3.bf16.msra.mxu0 %v2588_v22 }
  0x11   :  { %2580 = vmatpush3.bf16.msra.mxu1 %v2588_v22  ;;  %2465 = vmatprep.subr.bf16.mxu0 %v3983_v20 }
  0x12   :  { %182 = vadd.xlane.f32.xlu1 %v181_v8  ;;  %2445 = vmatprep.subr.bf16.mxu1 %v3983_v20 }
  0x14   :  { %165 = vadd.xlane.f32.xlu0 %v164_v10  ;;  %v2313_v10 = vld [vmem:[%s3966_s4] ss:$0 sm:$0xff] }
  0x16   :  { %168 = vadd.xlane.f32.xlu1 %v167_v12 }
  0x18   :  { %185 = vadd.xlane.f32.xlu0 %v184_v15 }
  0x1a   :  { %188 = vadd.xlane.f32.xlu1 %v187_v16 }
  0x1c   :  { %171 = vadd.xlane.f32.xlu0 %v170_v18 }
  0x1e   :  { %191 = vadd.xlane.f32.xlu1 %v190_v19 }
  0x2f   :  { %461 = vperm.xlu1 %2586, %v451_v24  }
  0x32   :  { %457 = vperm.xlu0 %2585, %v450_v25  }
  0x33   :  { %465 = vperm.xlu1 %2586, %v452_v26  }
  0x95   :  { %v160_v27 = vpop.xlane.xlu0 %159 }
  0x96   :  { %v193_v28 = vmul.f32 0.03125, %v160_v27 }
  0x97   :  { %v180_v29 = vpop.xlane.xlu1 %179 }
  0x98   :  { %v203_v30 = vmul.f32 %v193_v28, %v193_v28  ;;  %v198_v31 = vmul.f32 0.03125, %v180_v29  ;;  %v213_v60 = vsub.f32 %v2779_v0, %v193_v28 }
  0x99   :  { %v163_v32 = vpop.xlane.xlu0 %162 }
  0x9a   :  { %v208_v33 = vsub.f32 %v198_v31, %v203_v30  ;;  %v194_v34 = vmul.f32 0.03125, %v163_v32  ;;  %v453_v31 = vld [vmem:[%s4003_s30 + $0x18] sm:$0xff]  ;;  %v2591_v32 = vld [vmem:[%s3964_s7 + $0x8] sm:$0xff]  }
  0x9b   :  { %v183_v35 = vpop.xlane.xlu1 %182  ;;  %469 = vperm.xlu1 %2586, %v453_v31  }
  0x9c   :  { %v218_v36 = vadd.f32 1e-05, %v208_v33  ;;  %v204_v37 = vmul.f32 %v194_v34, %v194_v34  ;;  %v199_v38 = vmul.f32 0.03125, %v183_v35  ;;  %v214_v4 = vsub.f32 %v2784_v1, %v194_v34  ;;  %v2592_v33 = vld [vmem:[%s3964_s7] sm:$0xff]  }
  0x9d   :  { %v166_v39 = vpop.xlane.xlu0 %165  ;;  %v454_v34 = vld [vmem:[%s4003_s30 + $0x20] sm:$0xff]  ;;  %v475_v35 = vlaneseq }
  0x9e   :  { %2607 = vrsqrt.f32 %v218_v36  ;;  %v209_v40 = vsub.f32 %v199_v38, %v204_v37  ;;  %v195_v41 = vmul.f32 0.03125, %v166_v39 }
  0x9f   :  { %v169_v42 = vpop.xlane.xlu1 %168  ;;  %473 = vperm.xlu1 %2586, %v454_v34   ;;  %v2893_v36 = vshrl.u32 %v475_v35, 7 }
  0xa0   :  { %v219_v43 = vadd.f32 1e-05, %v209_v40  ;;  %v205_v44 = vmul.f32 %v195_v41, %v195_v41  ;;  %v196_v45 = vmul.f32 0.03125, %v169_v42  ;;  %v215_v11 = vsub.f32 %v2798_v7, %v195_v41 }
  0xa1   :  { %v186_v46 = vpop.xlane.xlu0 %185  ;;  %v2896_v37 = vsub.s32 0, %v2893_v36  ;;  %v2899_v38 = vsub.s32 1, %v2893_v36  ;;  %v2902_v39 = vsub.s32 2, %v2893_v36  ;;  %v2905_v40 = vsub.s32 3, %v2893_v36 }
  0xa2   :  { %2609 = vrsqrt.f32 %v219_v43  ;;  %v200_v47 = vmul.f32 0.03125, %v186_v46  ;;  %v206_v49 = vmul.f32 %v196_v45, %v196_v45  ;;  %v216_v16 = vsub.f32 %v2804_v9, %v196_v45  ;;  %v2589_v9 = vld [vmem:[%s3964_s7 + $0x18] sm:$0xff]  }
  0xa3   :  { %v189_v48 = vpop.xlane.xlu1 %188  ;;  %v2908_v42 = vsub.s32 4, %v2893_v36  ;;  %v2911_v43 = vsub.s32 5, %v2893_v36  ;;  %v2917_v45 = vsub.s32 7, %v2893_v36 }
  0xa4   :  { %v210_v50 = vsub.f32 %v200_v47, %v205_v44  ;;  %v201_v51 = vmul.f32 0.03125, %v189_v48  ;;  %v2914_v44 = vsub.s32 6, %v2893_v36  ;;  %v120_v48 = vld [vmem:[%s3967_s1 + $0x8] sm:$0x1] }
  0xa5   :  { %v172_v52 = vpop.xlane.xlu0 %171 }
  0xa6   :  { %v220_v53 = vadd.f32 1e-05, %v210_v50  ;;  %v211_v54 = vsub.f32 %v201_v51, %v206_v49  ;;  %v197_v55 = vmul.f32 0.03125, %v172_v52  ;;  %v121_v49 = vld [vmem:[%s3967_s1 + $0x9] sm:$0x1] }
  0xa7   :  { %v192_v56 = vpop.xlane.xlu1 %191  ;;  %v122_v52 = vld [vmem:[%s3967_s1 + $0xa] sm:$0x1] }
  0xa8   :  { %2611 = vrsqrt.f32 %v220_v53  ;;  %v221_v57 = vadd.f32 1e-05, %v211_v54  ;;  %v207_v58 = vmul.f32 %v197_v55, %v197_v55  ;;  %v202_v59 = vmul.f32 0.03125, %v192_v56  ;;  %v123_v53 = vld [vmem:[%s3967_s1 + $0xb] sm:$0x1] }
  0xa9   :  { %v217_v23 = vsub.f32 %v2817_v14, %v197_v55  ;;  %v2590_v14 = vld [vmem:[%s3964_s7 + $0x10] sm:$0xff]   ;;  %v124_v54 = vld [vmem:[%s3967_s1 + $0xc] sm:$0x1] }
  0xaa   :  { %2613 = vrsqrt.f32 %v221_v57  ;;  %v212_v62 = vsub.f32 %v202_v59, %v207_v58  ;;  %v125_v57 = vld [vmem:[%s3967_s1 + $0xd] sm:$0x1] }
  0xab   :  { %v2608_v61 = vpop.eup %2607  ;;  %v462_v41 = vpop.permute.xlu1 %461 }
  0xac   :  { %v228_v63 = vmul.f32 %v2608_v61, %v213_v60  ;;  %v222_v2 = vadd.f32 1e-05, %v212_v62  ;;  %v510_v46 = vrot.slane %v462_v41, %v2896_v37  ;;  %v514_v47 = vrot.slane %v462_v41, %v2899_v38  ;;  %v126_v60 = vld [vmem:[%s3967_s1 + $0xe] sm:$0x1]  ;;  %v127_v61 = vld [vmem:[%s3967_s1 + $0xf] sm:$0x1] }
  0xad   :  { %v518_v50 = vrot.slane %v462_v41, %v2902_v39  ;;  %v522_v51 = vrot.slane %v462_v41, %v2905_v40  ;;  %v526_v55 = vrot.slane %v462_v41, %v2908_v42  ;;  %v530_v56 = vrot.slane %v462_v41, %v2911_v43 }
  0xae   :  { %2615 = vrsqrt.f32 %v222_v2  ;;  %v239_v8 = vmul.f32 %v2312_v3, %v228_v63  ;;  %v534_v58 = vrot.slane %v462_v41, %v2914_v44  ;;  %v538_v59 = vrot.slane %v462_v41, %v2917_v45 }
  0xaf   :  { %v2610_v5 = vpop.eup %2609  ;;  %v2951_v62 = vmul.f32 %v510_v46, %v120_v48  ;;  %v2953_v63 = vmul.f32 %v514_v47, %v121_v49  ;;  %v2955_v2 = vmul.f32 %v518_v50, %v122_v52  ;;  %v128_v49 = vld [vmem:[%s3967_s1 + $0x10] sm:$0x1]  ;;  %v129_v50 = vld [vmem:[%s3967_s1 + $0x11] sm:$0x1]  ;;  %v130_v52 = vld [vmem:[%s3967_s1 + $0x12] sm:$0x1] }
  0xb0   :  { %v229_v6 = vmul.f32 %v2610_v5, %v214_v4  ;;  %v250_v12 = vadd.f32 %v2313_v10, %v239_v8  ;;  %v2959_v4 = vmul.f32 %v526_v55, %v124_v54  ;;  %v2961_v5 = vmul.f32 %v530_v56, %v125_v57 }
  0xb1   :  { %v2965_v8 = vmul.f32 %v534_v58, %v126_v60 }
  0xb2   :  { %v240_v0 = vmul.f32 %v2312_v3, %v229_v6 }
  0xb4   :  { %v251_v13 = vadd.f32 %v2313_v10, %v240_v0 }
  0xb5   :  { %v2612_v15 = vpop.eup %2611 }
  0xb6   :  { %v255_v17 = vpack.c.bf16 %v251_v13, %v250_v12  ;;  %v230_v18 = vmul.f32 %v2612_v15, %v215_v11  ;;  %v458_v12 = vpop.permute.xlu0 %457  ;;  %v112_v15 = vld [vmem:[%s3967_s1] sm:$0x1] }
  0xb7   :  { %v2614_v19 = vpop.eup %2613 }
  0xb8   :  { %2434 = vmatmul.mubr.msk.bf16.vlgmr.msra.gmra.mxu0 %vm157_vm0, %v255_v17  ;;  %v231_v1 = vmul.f32 %v2614_v19, %v216_v16  ;;  %v241_v21 = vmul.f32 %v2312_v3, %v230_v18  ;;  %v113_v16 = vld [vmem:[%s3967_s1 + $0x1] sm:$0x1]  ;;  %v114_v17 = vld [vmem:[%s3967_s1 + $0x2] sm:$0x1]  ;;  %v115_v18 = vld [vmem:[%s3967_s1 + $0x3] sm:$0x1] }
  0xb9   :  { %2469 = vmatprep.mubr.msk.bf16.mxu0 %vm2678_vm1, %v3983_v20  ;;  %v116_v19 = vld [vmem:[%s3967_s1 + $0x4] sm:$0x1] }
  0xba   :  { %v242_v22 = vmul.f32 %v2312_v3, %v231_v1  ;;  %v252_v7 = vadd.f32 %v2313_v10, %v241_v21  ;;  %v478_v1 = vrot.slane %v458_v12, %v2896_v37  ;;  %v482_v21 = vrot.slane %v458_v12, %v2899_v38 }
  0xbb   :  { %v2616_v24 = vpop.eup %2615 }
  0xbc   :  { %v253_v25 = vadd.f32 %v2313_v10, %v242_v22  ;;  %v232_v26 = vmul.f32 %v2616_v24, %v217_v23  ;;  %v486_v22 = vrot.slane %v458_v12, %v2902_v39  ;;  %v490_v23 = vrot.slane %v458_v12, %v2905_v40 }
  0xbd   :  { %v494_v24 = vrot.slane %v458_v12, %v2908_v42 }
  0xbe   :  { %v256_v27 = vpack.c.bf16 %v253_v25, %v252_v7  ;;  %v243_v28 = vmul.f32 %v2312_v3, %v232_v26  ;;  %v2957_v3 = vmul.f32 %v522_v51, %v123_v53  ;;  %v498_v7 = vrot.slane %v458_v12, %v2911_v43  ;;  %v117_v25 = vld [vmem:[%s3967_s1 + $0x5] sm:$0x1]  ;;  %v466_v51 = vpop.permute.xlu1 %465  ;;  %v131_v53 = vld [vmem:[%s3967_s1 + $0x13] sm:$0x1] }
  0xbf   :  { %v502_v26 = vrot.slane %v458_v12, %v2914_v44  ;;  %v3013_v31 = vmul.f32 %v490_v23, %v115_v18  ;;  %v542_v54 = vrot.slane %v466_v51, %v2896_v37  ;;  %v546_v55 = vrot.slane %v466_v51, %v2899_v38  ;;  %v135_v23 = vld [vmem:[%s3967_s1 + $0x17] sm:$0x1] }
  0xc0   :  { %2438 = vmatmul.mubr.msk.bf16.vlgmr.msra.gmra.mxu1 %vm157_vm0, %v256_v27  ;;  %v254_v29 = vadd.f32 %v2313_v10, %v243_v28  ;;  %v2967_v10 = vmul.f32 %v538_v59, %v127_v61  ;;  %v118_v27 = vld [vmem:[%s3967_s1 + $0x6] sm:$0x1]  ;;  %v119_v28 = vld [vmem:[%s3967_s1 + $0x7] sm:$0x1]  ;;  %v550_v56 = vrot.slane %v466_v51, %v2902_v39  ;;  %v554_v57 = vrot.slane %v466_v51, %v2905_v40 }
  0xc1   :  { %2441 = vmatprep.mubr.msk.bf16.mxu1 %vm2678_vm1, %v3983_v20  ;;  %2446 = vmatpush3.bf16.msra.mxu1 %v2589_v9  ;;  %v506_v9 = vrot.slane %v458_v12, %v2917_v45  ;;  %v3019_v34 = vmul.f32 %v502_v26, %v118_v27  ;;  %v3047_v58 = vmul.f32 %v542_v54, %v128_v49 }
  0xc2   :  { %2447 = vmatprep.subr.bf16.mxu1 %v3983_v20  ;;  %v257_v30 = vpack.c.bf16 %v254_v29, %v254_v29  ;;  %v3009_v29 = vmul.f32 %v482_v21, %v113_v16  ;;  %v3049_v59 = vmul.f32 %v546_v55, %v129_v50  ;;  %v3051_v60 = vmul.f32 %v550_v56, %v130_v52  ;;  %v133_v21 = vld [vmem:[%s3967_s1 + $0x15] sm:$0x1] }
  0xc3   :  { %v3021_v35 = vmul.f32 %v506_v9, %v119_v28  ;;  %v3053_v61 = vmul.f32 %v554_v57, %v131_v53  ;;  %v558_v16 = vrot.slane %v466_v51, %v2908_v42  ;;  %v562_v18 = vrot.slane %v466_v51, %v2911_v43 }
  0xc4   :  { %4004 = vst [vmem:[#allocation2_spill] sm:$0xff] %v3049_v59  ;;  %4005 = vst [vmem:[#allocation3_spill] sm:$0xff] %v3051_v60  ;;  %v2680_v9 = vmov 1966171168   ;;  %v802_v53 = vpack.c.bf16 %v3009_v29, %v3009_v29  ;;  %v810_v54 = vpack.c.bf16 %v2953_v63, %v2953_v63  ;;  %v811_v56 = vpack.c.bf16 %v2955_v2, %v2955_v2 }
  0xc5   :  { %2448 = vmatpush3.bf16.msra.mxu1 %v2590_v14  ;;  %v3007_v14 = vmul.f32 %v478_v1, %v112_v15  ;;  %4006 = vst [vmem:[#allocation4_spill] sm:$0xff] %v3053_v61  ;;  %v570_v1 = vrot.slane %v466_v51, %v2917_v45  ;;  %v1530_v27 = vunpack.c.l.s4 %v2680_v9  ;;  %v814_v15 = vpack.c.bf16 %v2961_v5, %v2961_v5 }
  0xc6   :  { %2449 = vmatprep.subr.bf16.mxu1 %v3983_v20  ;;  %v819_v6 = vpack.c.bf16 %v3051_v60, %v3051_v60 }
  0xc7   :  { %v3081_v26 = vmul.f32 %v570_v1, %v135_v23  ;;  %v1531_v50 = vunpack.c.0.s8 %v1530_v27  ;;  %v801_v57 = vpack.c.bf16 %v3007_v14, %v3007_v14 }
  0xc8   :  { %2442 = vmatmul.mubr.msk.bf16.gmra.mxu1 %vm157_vm0, %v257_v30  ;;  %v3011_v30 = vmul.f32 %v486_v22, %v114_v17  ;;  %v132_v17 = vld [vmem:[%s3967_s1 + $0x14] sm:$0x1]  ;;  %v134_v22 = vld [vmem:[%s3967_s1 + $0x16] sm:$0x1] }
  0xc9   :  { %2453 = vmatprep.mubr.msk.bf16.mxu1 %vm2678_vm1, %v3983_v20  ;;  %2450 = vmatpush3.bf16.msra.mxu1 %v2591_v32  ;;  %v3015_v32 = vmul.f32 %v494_v24, %v116_v19  ;;  %v566_v19 = vrot.slane %v466_v51, %v2914_v44  ;;  %v3075_v24 = vmul.f32 %v558_v16, %v132_v17  ;;  %v890_v17 = vunpack.c.l.b16 %v810_v54 }
  0xca   :  { %2451 = vmatprep.subr.bf16.mxu1 %v3983_v20  ;;  %v3088_v51 = vsub.s32 %v1531_v50, %v2893_v36  ;;  %v803_v55 = vpack.c.bf16 %v3011_v30, %v3011_v30  ;;  %v882_v36 = vunpack.c.l.b16 %v802_v53  ;;  %v809_v16 = vpack.c.bf16 %v2951_v62, %v2951_v62 }
  0xcb   :  { %4007 = vst [vmem:[#allocation5_spill] sm:$0xff] %v3075_v24  ;;  %v942_v27 = vrot.slane %v890_v17, 7  ;;  %v813_v50 = vpack.c.bf16 %v2959_v4, %v2959_v4 }
  0xcc   :  { %v883_v1 = vunpack.c.l.b16 %v803_v55  ;;  %v921_v23 = vrot.slane %v882_v36, 7  ;;  %v889_v9 = vunpack.c.l.b16 %v809_v16 }
  0xcd   :  { %2452 = vmatpush3.bf16.msra.mxu1 %v2592_v33  ;;  %v3017_v33 = vmul.f32 %v498_v7, %v117_v25  ;;  %v3077_v7 = vmul.f32 %v562_v18, %v133_v21  ;;  %v3079_v25 = vmul.f32 %v566_v19, %v134_v22  ;;  %v804_v18 = vpack.c.bf16 %v3013_v31, %v3013_v31 }
  0xce   :  { %2481 = vmatprep.subr.bf16.mxu1 %v3983_v20  ;;  %v812_v19 = vpack.c.bf16 %v2957_v3, %v2957_v3  ;;  %v891_v21 = vunpack.c.l.b16 %v811_v56  ;;  %v881_v22 = vunpack.c.l.b16 %v801_v57  ;;  %v924_v28 = vrot.slane %v883_v1, 6 }
  0xcf   :  { %4008 = vst [vmem:[#allocation6_spill] sm:$0xff] %v3077_v7  ;;  %v1626_v49 = vcombine.low %v3079_v25, %v3081_v26  ;;  %v884_v53 = vunpack.c.l.b16 %v804_v18  ;;  %v806_v56 = vpack.c.bf16 %v3017_v33, %v3017_v33  ;;  %v943_v36 = vsel %vm922_vm2, %v942_v27, %v889_v9 }
  0xd0   :  { %v892_v54 = vunpack.c.l.b16 %v812_v19  ;;  %v944_v55 = vrot.slane %v891_v21, 6  ;;  %v923_v57 = vsel %vm922_vm2, %v921_v23, %v881_v22  ;;  %v893_v17 = vunpack.c.l.b16 %v813_v50 }
  0xd1   :  { %v3091_v52 = vrot.slane %v1626_v49, %v3088_v51  ;;  %v805_v49 = vpack.c.bf16 %v3015_v32, %v3015_v32  ;;  %v927_v12 = vrot.slane %v884_v53, 5  ;;  %v807_v18 = vpack.c.bf16 %v3019_v34, %v3019_v34 }
  0xd2   :  { %v946_v13 = vrot.slane %v892_v54, 5  ;;  %v926_v19 = vsel %vm925_vm3, %v924_v28, %v923_v57  ;;  %v815_v1 = vpack.c.bf16 %v2965_v8, %v2965_v8  ;;  %v894_v21 = vunpack.c.l.b16 %v814_v15 }
  0xd3   :  { %4009 = vst [vmem:[#allocation7_spill] sm:$0xff] %v3091_v52  ;;  %v885_v16 = vunpack.c.l.b16 %v805_v49  ;;  %v945_v11 = vsel %vm925_vm3, %v944_v55, %v943_v36  ;;  %v886_v0 = vunpack.c.l.b16 %v806_v56  ;;  %v808_v22 = vpack.c.bf16 %v3021_v35, %v3021_v35 }
  0xd4   :  { %v948_v9 = vrot.slane %v893_v17, 4  ;;  %v929_v27 = vsel %vm928_vm4, %v927_v12, %v926_v19  ;;  %v816_v49 = vpack.c.bf16 %v2967_v10, %v2967_v10  ;;  %v887_v28 = vunpack.c.l.b16 %v807_v18 }
  0xd5   :  { %v930_v23 = vrot.slane %v885_v16, 4  ;;  %v818_v50 = vpack.c.bf16 %v3049_v59, %v3049_v59  ;;  %v947_v15 = vsel %vm928_vm4, %v946_v13, %v945_v11  ;;  %v895_v53 = vunpack.c.l.b16 %v815_v1  ;;  %v136_v13 = vld [vmem:[%s3967_s1 + $0x18] sm:$0x1]  ;;  %v137_v1 = vld [vmem:[%s3967_s1 + $0x19] sm:$0x1] }
  0xd6   :  { %v950_v54 = vrot.slane %v894_v21, 3  ;;  %v933_v55 = vrot.slane %v886_v0, 3  ;;  %v817_v56 = vpack.c.bf16 %v3047_v58, %v3047_v58  ;;  %v888_v57 = vunpack.c.l.b16 %v808_v22 }
  0xd7   :  { %v932_v36 = vsel %vm931_vm5, %v930_v23, %v929_v27  ;;  %v949_v12 = vsel %vm931_vm5, %v948_v9, %v947_v15  ;;  %v936_v16 = vrot.slane %v887_v28, 2  ;;  %v898_v17 = vunpack.c.l.b16 %v818_v50  ;;  %v138_v9 = vld [vmem:[%s3967_s1 + $0x1a] sm:$0x1]  ;;  %v139_v27 = vld [vmem:[%s3967_s1 + $0x1b] sm:$0x1] }
  0xd8   :  { %v896_v18 = vunpack.c.l.b16 %v816_v49  ;;  %v952_v19 = vrot.slane %v895_v53, 2  ;;  %v935_v11 = vsel %vm934_vm6, %v933_v55, %v932_v36  ;;  %v897_v0 = vunpack.c.l.b16 %v817_v56 }
  0xd9   :  { %v939_v22 = vrot.slane %v888_v57, 1  ;;  %v951_v23 = vsel %vm934_vm6, %v950_v54, %v949_v12  ;;  %v956_v53 = vrot.slane %v898_v17, 7  ;;  %v938_v54 = vsel %vm937_vm7, %v936_v16, %v935_v11  ;;  %v3169_v57 = vld [vmem:[%s3969_s6] ss:$0 sm:$0xff] }
  0xda   :  { %v954_v55 = vrot.slane %v896_v18, 1  ;;  %v820_v56 = vpack.c.bf16 %v3053_v61, %v3053_v61  ;;  %v953_v47 = vsel %vm937_vm7, %v952_v19, %v951_v23  ;;  %v821_v17 = vpack.c.bf16 %v3075_v24, %v3075_v24 }
  0xdb   :  { %v3178_v16 = vunpack.c.l.b16 %v819_v6  ;;  %v822_v19 = vpack.c.bf16 %v3077_v7, %v3077_v7 }
  0xdc   :  { %v3195_v23 = vsel %vm940_vm8, %v954_v55, %v953_v47 }
 0x116   :  { %v3146_v21 = vpop.permute.xlu1 %469 }
 0x117   :  { %v574_v49 = vrot.slane %v3146_v21, %v2896_v37  ;;  %v578_v28 = vrot.slane %v3146_v21, %v2899_v38  ;;  %v582_v50 = vrot.slane %v3146_v21, %v2902_v39  ;;  %v586_v15 = vrot.slane %v3146_v21, %v2905_v40 }
 0x118   :  { %v594_v47 = vrot.slane %v3146_v21, %v2911_v43  ;;  %v598_v20 = vrot.slane %v3146_v21, %v2914_v44  ;;  %v602_v7 = vrot.slane %v3146_v21, %v2917_v45 }
 0x119   :  { %v3171_v12 = vmul.f32 %v574_v49, %v136_v13  ;;  %v3173_v48 = vmul.f32 %v578_v28, %v137_v1  ;;  %v3180_v18 = vmul.f32 %v582_v50, %v138_v9  ;;  %v3182_v11 = vmul.f32 %v586_v15, %v139_v27  ;;  %v140_v27 = vld [vmem:[%s3967_s1 + $0x1c] sm:$0x1] }
 0x11a   :  { %v3187_v13 = vsel %vm940_vm8, %v939_v22, %v938_v54  ;;  %v3201_v22 = vunpack.c.l.b16 %v820_v56  ;;  %v3203_v49 = vunpack.c.l.b16 %v821_v17  ;;  %v957_v28 = vsel %vm922_vm2, %v956_v53, %v897_v0  ;;  %v145_v54 = vld [vmem:[%s3967_s1 + $0x21] sm:$0x1]  ;;  %v3217_v55 = vpop.permute.xlu1 %473  ;;  %v147_v17 = vld [vmem:[%s3967_s1 + $0x23] sm:$0x1] }
 0x11b   :  { %4010 = vst [vmem:[#allocation8_spill] sm:$0xff] %v3171_v12  ;;  %4011 = vst [vmem:[#allocation9_spill] sm:$0xff] %v3173_v48  ;;  %v590_v15 = vrot.slane %v3146_v21, %v2908_v42  ;;  %v958_v0 = vrot.slane %v3178_v16, 6  ;;  %v826_v56 = vpack.c.bf16 %v3173_v48, %v3173_v48  ;;  %v610_v6 = vrot.slane %v3217_v55, %v2899_v38 }
 0x11c   :  { %v614_v16 = vrot.slane %v3217_v55, %v2902_v39  ;;  %v618_v52 = vrot.slane %v3217_v55, %v2905_v40  ;;  %v825_v39 = vpack.c.bf16 %v3171_v12, %v3171_v12  ;;  %v827_v24 = vpack.c.bf16 %v3180_v18, %v3180_v18  ;;  %v142_v12 = vld [vmem:[%s3967_s1 + $0x1e] sm:$0x1] }
 0x11d   :  { %v3251_v48 = vmul.f32 %v610_v6, %v145_v54  ;;  %v906_v6 = vunpack.c.l.b16 %v826_v56  ;;  %v4018_v56 = vmov 0.0  }
 0x11e   :  { %v3259_v60 = vmul.f32 %v618_v52, %v147_v17  ;;  %v3286_v17 = vmul.f32 %v598_v20, %v142_v12 }
 0x11f   :  { %4013 = vst [vmem:[#allocation11_spill] sm:$0xff] %v3251_v48  ;;  %v834_v20 = vpack.c.bf16 %v3251_v48, %v3251_v48 }
 0x120   :  { %4015 = vst [vmem:[#allocation13_spill] sm:$0xff] %v3259_v60 }
 0x121   :  { %v914_v48 = vunpack.c.l.b16 %v834_v20  ;;  %v634_v20 = vrot.slane %v3217_v55, %v2917_v45  ;;  %v836_v45 = vpack.c.bf16 %v3259_v60, %v3259_v60 }
 0x178   :  { %v319_v36 = vpop.f32.mrf.mxu0 }
 0x179   :  { %v320_v1 = vadd.f32 %v3169_v57, %v319_v36  ;;  %v146_v36 = vld [vmem:[%s3967_s1 + $0x22] sm:$0x1] }
 0x17a   :  { %v2435_v46 = vpop.f32.mrf.mxu0  ;;  %v3257_v61 = vmul.f32 %v614_v16, %v146_v36  ;;  %v959_v16 = vsel %vm925_vm3, %v958_v0, %v957_v28 }
 0x17b   :  { %v823_v46 = vpack.c.bf16 %v3079_v25, %v3079_v25  ;;  %v144_v25 = vld [vmem:[%s3967_s1 + $0x20] sm:$0x1] }
 0x17c   :  { %v322_v9 = vpop.f32.mrf.mxu0  ;;  %4014 = vst [vmem:[#allocation12_spill] sm:$0xff] %v3257_v61  ;;  %v835_v36 = vpack.c.bf16 %v3257_v61, %v3257_v61 }
 0x17d   :  { %v323_v50 = vadd.f32 %v3169_v57, %v322_v9  ;;  %v606_v9 = vrot.slane %v3217_v55, %v2896_v37  ;;  %v141_v37 = vld [vmem:[%s3967_s1 + $0x1d] sm:$0x1] }
 0x17e   :  { %v2436_v53 = vpop.f32.mrf.mxu0  ;;  %v3271_v21 = vmul.f32 %v594_v47, %v141_v37  ;;  %v2594_v47 = vld [vmem:[%s3968_s10] sm:$0xff]   ;;  %v907_v37 = vunpack.c.l.b16 %v827_v24  ;;  %v622_v24 = vrot.slane %v3217_v55, %v2908_v42 }
 0x17f   :  { %v341_v53 = vmax.f32 %v320_v1, 0.0  ;;  %v342_v41 = vmax.f32 %v323_v50, 0.0  ;;  %v2593_v1 = vld [vmem:[%s3968_s10 + $0x8] sm:$0xff]   ;;  %v3249_v50 = vmul.f32 %v606_v9, %v144_v25  ;;  %v3264_v25 = vmul.f32 %v590_v15, %v140_v27 }
 0x180   :  { %v327_v38 = vpop.f32.mrf.mxu1  ;;  %4017 = vst [vmem:[#allocation15_spill] sm:$0xff] %v3271_v21  ;;  %v3279_v27 = vunpack.c.l.b16 %v823_v46  ;;  %v828_v9 = vpack.c.bf16 %v3182_v11, %v3182_v11  ;;  %v830_v28 = vpack.c.bf16 %v3271_v21, %v3271_v21  ;;  %v972_v54 = vrot.slane %v907_v37, 6 }
 0x181   :  { %4012 = vst [vmem:[#allocation10_spill] sm:$0xff] %v3249_v50  ;;  %v346_v40 = vpack.c.bf16 %v342_v41, %v341_v53  ;;  %4016 = vst [vmem:[#allocation14_spill] sm:$0xff] %v3264_v25  ;;  %v143_v41 = vld [vmem:[%s3967_s1 + $0x1f] sm:$0x1]  ;;  %v328_v52 = vadd.f32 %v3169_v57, %v327_v38  ;;  %v905_v53 = vunpack.c.l.b16 %v825_v39  ;;  %v829_v12 = vpack.c.bf16 %v3264_v25, %v3264_v25 }
 0x182   :  { %v2439_v59 = vpop.f32.mrf.mxu1  ;;  %v3294_v38 = vmul.f32 %v602_v7, %v143_v41  ;;  %v626_v41 = vrot.slane %v3217_v55, %v2911_v43  ;;  %v630_v37 = vrot.slane %v3217_v55, %v2914_v44  ;;  %v151_v44 = vld [vmem:[%s3967_s1 + $0x27] sm:$0x1] }
 0x183   :  { %2454 = vmatmul.mubr.msk.bf16.vlgmr.msra.gmra.mxu1 %vm379_vm9, %v346_v40  ;;  %v3277_v59 = vunpack.c.l.b16 %v822_v19  ;;  %v960_v19 = vrot.slane %v3201_v22, 5  ;;  %v970_v40 = vrot.slane %v906_v6, 7  ;;  %v343_v22 = vmax.f32 %v328_v52, 0.0  ;;  %v148_v6 = vld [vmem:[%s3967_s1 + $0x24] sm:$0x1] }
 0x184   :  { %v330_v15 = vpop.f32.mrf.mxu1  ;;  %2457 = vmatprep.mubr.msk.bf16.mxu1 %vm2678_vm1, %v4018_v56  ;;  %2482 = vmatpush3.bf16.msra.mxu1 %v2593_v1  ;;  %v908_v52 = vunpack.c.l.b16 %v828_v9  ;;  %v909_v43 = vunpack.c.l.b16 %v829_v12  ;;  %v149_v9 = vld [vmem:[%s3967_s1 + $0x25] sm:$0x1] }
 0x185   :  { %v331_v46 = vadd.f32 %v3169_v57, %v330_v15  ;;  %2483 = vmatprep.subr.bf16.mxu1 %v4018_v56  ;;  %v833_v15 = vpack.c.bf16 %v3249_v50, %v3249_v50  ;;  %v971_v21 = vsel %vm922_vm2, %v970_v40, %v905_v53  ;;  %v831_v53 = vpack.c.bf16 %v3286_v17, %v3286_v17 }
 0x186   :  { %v2440_v1 = vpop.f32.mrf.mxu1  ;;  %v961_v40 = vsel %vm928_vm4, %v960_v19, %v959_v16  ;;  %v984_v16 = vrot.slane %v914_v48, 7  ;;  %v910_v19 = vunpack.c.l.b16 %v830_v28  ;;  %v964_v48 = vrot.slane %v3277_v59, 3 }
 0x187   :  { %v344_v0 = vmax.f32 %v331_v46, 0.0  ;;  %v1675_v46 = vcombine.low %v3286_v17, %v3294_v38  ;;  %v911_v50 = vunpack.c.l.b16 %v831_v53 }
 0x188   :  { %v335_v39 = vpop.f32.mrf.mxu1  ;;  %2484 = vmatpush3.bf16.msra.mxu1 %v2594_v47  ;;  %v978_v28 = vrot.slane %v910_v19, 3 }
 0x189   :  { %v347_v42 = vpack.c.bf16 %v344_v0, %v343_v22  ;;  %v336_v1 = vadd.f32 %v3169_v57, %v335_v39  ;;  %2513 = vmatprep.subr.bf16.mxu1 %v4018_v56  ;;  %v3321_v47 = vrot.slane %v1675_v46, %v3088_v51  ;;  %v711_v57 = vmul.f32 %v622_v24, %v148_v6 }
 0x18a   :  { %v2443_v7 = vpop.f32.mrf.mxu1  ;;  %v962_v22 = vrot.slane %v3203_v49, 4  ;;  %v974_v0 = vrot.slane %v908_v52, 5  ;;  %v150_v49 = vld [vmem:[%s3967_s1 + $0x26] sm:$0x1]  ;;  %v973_v24 = vsel %vm925_vm3, %v972_v54, %v971_v21  ;;  %v915_v39 = vunpack.c.l.b16 %v835_v36 }
 0x18b   :  { %4019 = vst [vmem:[#allocation16_spill] sm:$0xff] %v3321_v47  ;;  %2458 = vmatmul.mubr.msk.bf16.gmra.mxu1 %vm379_vm9, %v347_v42  ;;  %v345_v55 = vmax.f32 %v336_v1, 0.0  ;;  %v712_v7 = vmul.f32 %v626_v41, %v149_v9  ;;  %v913_v6 = vunpack.c.l.b16 %v833_v15  ;;  %v976_v52 = vrot.slane %v909_v43, 4 }
 0x18c   :  { %v338_v12 = vpop.f32.mrf.mxu1  ;;  %2461 = vmatprep.mubr.msk.bf16.mxu1 %vm2678_vm1, %v4018_v56  ;;  %v713_v46 = vmul.f32 %v630_v37, %v150_v49  ;;  %v714_v42 = vmul.f32 %v634_v20, %v151_v44  ;;  %v832_v47 = vpack.c.bf16 %v3294_v38, %v3294_v38  ;;  %v975_v60 = vsel %vm928_vm4, %v974_v0, %v973_v24  ;;  %v2595_v24 = vld [vmem:[%s3968_s10 + $0x18] sm:$0xff]  }
 0x18d   :  { %v837_v12 = vpack.c.bf16 %v711_v57, %v711_v57  ;;  %v1723_v61 = vcombine.low %v711_v57, %v712_v7  ;;  %v916_v1 = vunpack.c.l.b16 %v836_v45  ;;  %v348_v25 = vpack.c.bf16 %v345_v55, %v345_v55 }
 0x18e   :  { %v2444_v17 = vpop.f32.mrf.mxu1  ;;  %v986_v54 = vrot.slane %v915_v39, 6  ;;  %v1724_v21 = vcombine.low %v713_v46, %v714_v42  ;;  %v838_v41 = vpack.c.bf16 %v712_v7, %v712_v7  ;;  %v985_v15 = vsel %vm922_vm2, %v984_v16, %v913_v6 }
 0x18f   :  { %v3350_v36 = vrot.slane %v1723_v61, %v3088_v51  ;;  %v963_v38 = vsel %vm931_vm5, %v962_v22, %v961_v40  ;;  %v977_v43 = vsel %vm931_vm5, %v976_v52, %v975_v60  ;;  %v917_v9 = vunpack.c.l.b16 %v837_v12  ;;  %v2596_v52 = vld [vmem:[%s3968_s10 + $0x10] sm:$0xff]  }
 0x190   :  { %v3358_v57 = vrot.slane %v1724_v21, %v3088_v51  ;;  %v4020_v61 = vpack.c.bf16 %v3081_v26, %v3081_v26  ;;  %v912_v37 = vunpack.c.l.b16 %v832_v47  ;;  %v966_v20 = vrot.slane %v3279_v27, 2 }
 0x191   :  { %v988_v53 = vrot.slane %v916_v1, 5  ;;  %v839_v0 = vpack.c.bf16 %v713_v46, %v713_v46  ;;  %v987_v22 = vsel %vm925_vm3, %v986_v54, %v985_v15  ;;  %v965_v40 = vsel %vm934_vm6, %v964_v48, %v963_v38 }
 0x192   :  { %v904_v59 = vunpack.c.l.b16 %v4020_v61  ;;  %v1754_v60 = vcombine.low %v3350_v36, %v3358_v57  ;;  %v979_v49 = vsel %vm934_vm6, %v978_v28, %v977_v43  ;;  %v918_v44 = vunpack.c.l.b16 %v838_v41  ;;  %v2597_v28 = vld [vmem:[%s3968_s10 + $0x28] sm:$0xff]   ;;  %v2598_v41 = vld [vmem:[%s3968_s10 + $0x20] sm:$0xff]  }
 0x193   :  { %2462 = vmatmul.mubr.msk.bf16.gmra.mxu1 %vm379_vm9, %v348_v25  ;;  %v980_v25 = vrot.slane %v911_v50, 2  ;;  %v3373_v26 = vpack.c.b16 %v3195_v23, %v3187_v13  ;;  %v990_v47 = vrot.slane %v917_v9, 4  ;;  %v982_v27 = vrot.slane %v912_v37, 1 }
 0x194   :  { %2485 = vmatprep.mubr.msk.bf16.mxu1 %vm2678_vm1, %v4018_v56  ;;  %v968_v45 = vrot.slane %v904_v59, 1  ;;  %v840_v55 = vpack.c.bf16 %v714_v42, %v714_v42  ;;  %v989_v50 = vsel %vm928_vm4, %v988_v53, %v987_v22  ;;  %v967_v7 = vsel %vm937_vm7, %v966_v20, %v965_v40 }
 0x195   :  { %v981_v39 = vsel %vm937_vm7, %v980_v25, %v979_v49  ;;  %v919_v17 = vunpack.c.l.b16 %v839_v0  ;;  %v992_v6 = vrot.slane %v918_v44, 3  ;;  %v991_v13 = vsel %vm931_vm5, %v990_v47, %v989_v50  ;;  %v4037_v47 = vld [vmem:[#allocation8_spill] sm:$0xff] }
 0x196   :  { %v969_v23 = vsel %vm940_vm8, %v968_v45, %v967_v7  ;;  %v983_v16 = vsel %vm940_vm8, %v982_v27, %v981_v39  ;;  %v920_v19 = vunpack.c.l.b16 %v840_v55  ;;  %v4021_v15 = vcombine.low %v3007_v14, %v3009_v29  ;;  %v4038_v45 = vld [vmem:[#allocation9_spill] sm:$0xff] }
 0x197   :  { %v994_v46 = vrot.slane %v919_v17, 2  ;;  %v993_v42 = vsel %vm934_vm6, %v992_v6, %v991_v13  ;;  %v3393_v12 = vpack.c.b16 %v983_v16, %v969_v23  ;;  %v4022_v43 = vcombine.low %v3011_v30, %v3013_v31  ;;  %v4041_v13 = vld [vmem:[#allocation7_spill] sm:$0xff]  ;;  %v4042_v16 = vld [vmem:[#allocation14_spill] sm:$0xff] }
 0x198   :  { %v996_v1 = vrot.slane %v920_v19, 1  ;;  %v1535_v38 = vrot.slane %v4021_v15, %v3088_v51  ;;  %v4023_v61 = vcombine.low %v3015_v32, %v3017_v33  ;;  %v4024_v37 = vcombine.low %v3019_v34, %v3021_v35  ;;  %v4043_v19 = vld [vmem:[#allocation15_spill] sm:$0xff] }
 0x199   :  { %v995_v54 = vsel %vm937_vm7, %v994_v46, %v993_v42  ;;  %v1542_v9 = vrot.slane %v4022_v43, %v3088_v51  ;;  %v4025_v14 = vcombine.low %v2951_v62, %v2953_v63  ;;  %v4026_v30 = vcombine.low %v2955_v2, %v2957_v3  ;;  %v4029_v62 = vld [vmem:[#allocation2_spill] sm:$0xff]  ;;  %v4031_v2 = vld [vmem:[#allocation3_spill] sm:$0xff]  ;;  %v4032_v3 = vld [vmem:[#allocation4_spill] sm:$0xff] }
 0x19a   :  { %v997_v21 = vsel %vm940_vm8, %v996_v1, %v995_v54  ;;  %v1549_v59 = vrot.slane %v4023_v61, %v3088_v51  ;;  %v1556_v20 = vrot.slane %v4024_v37, %v3088_v51  ;;  %v4027_v32 = vcombine.low %v2959_v4, %v2961_v5  ;;  %v2599_v42 = vld [vmem:[%s3970_s9 + $0x8] sm:$0xff]   ;;  %v4045_v54 = vld [vmem:[#allocation10_spill] sm:$0xff]  ;;  %v4048_v43 = vld [vmem:[#allocation16_spill] sm:$0xff] }
 0x19b   :  { %2486 = vmatmul.mubr.msk.bf16.vlgmr.msra.gmra.mxu1 %vm157_vm0, %v3373_v26  ;;  %v3402_v48 = vpack.c.b16 %v997_v21, %v997_v21  ;;  %v1584_v29 = vrot.slane %v4025_v14, %v3088_v51  ;;  %v1591_v31 = vrot.slane %v4026_v30, %v3088_v51  ;;  %v4028_v34 = vcombine.low %v2965_v8, %v2967_v10  ;;  %v4034_v8 = vld [vmem:[#allocation5_spill] sm:$0xff]  ;;  %v4035_v10 = vld [vmem:[#allocation6_spill] sm:$0xff]  ;;  %v4046_v21 = vld [vmem:[#allocation11_spill] sm:$0xff] }
 0x19c   :  { %2489 = vmatprep.mubr.msk.bf16.mxu1 %vm2678_vm1, %v4018_v56  ;;  %2514 = vmatpush3.bf16.msra.mxu1 %v2595_v24  ;;  %v1598_v33 = vrot.slane %v4027_v32, %v3088_v51  ;;  %v1557_v53 = vcombine.low %v1535_v38, %v1542_v9  ;;  %v1558_v25 = vcombine.low %v1549_v59, %v1556_v20  ;;  %v4049_v61 = vld [vmem:[#allocation12_spill] sm:$0xff]  ;;  %v4050_v59 = vld [vmem:[#allocation13_spill] sm:$0xff] }
 0x19d   :  { %2515 = vmatprep.subr.bf16.mxu1 %v4018_v56  ;;  %v1605_v35 = vrot.slane %v4028_v34, %v3088_v51  ;;  %v4030_v63 = vcombine.low %v3047_v58, %v4029_v62  ;;  %v4033_v22 = vcombine.low %v4031_v2, %v4032_v3  ;;  %v1606_v4 = vcombine.low %v1584_v29, %v1591_v31 }
 0x19e   :  { %v4036_v49 = vcombine.low %v4034_v8, %v4035_v10  ;;  %v4039_v58 = vcombine.low %v4037_v47, %v4038_v45  ;;  %v3476_v55 = vrot.slane %v1557_v53, %v3088_v51  ;;  %v3479_v50 = vrot.slane %v1558_v25, %v3088_v51  ;;  %2466 = vmatpush3.bf16.msra.mxu0 %v2599_v42 }
 0x19f   :  { %v1633_v0 = vrot.slane %v4030_v63, %v3088_v51  ;;  %v1640_v40 = vrot.slane %v4033_v22, %v3088_v51  ;;  %v1607_v5 = vcombine.low %v1598_v33, %v1605_v35  ;;  %v4040_v7 = vcombine.low %v3180_v18, %v3182_v11  ;;  %2467 = vmatprep.subr.bf16.mxu0 %v4018_v56  ;;  %v2600_v33 = vld [vmem:[%s3970_s9] sm:$0xff]  }
 0x1a0   :  { %2516 = vmatpush3.bf16.msra.mxu1 %v2596_v52  ;;  %v1647_v44 = vrot.slane %v4036_v49, %v3088_v51  ;;  %v1682_v27 = vrot.slane %v4039_v58, %v3088_v51  ;;  %v3486_v17 = vrot.slane %v1606_v4, %v3088_v51  ;;  %v4044_v52 = vcombine.low %v4042_v16, %v4043_v19 }
 0x1a1   :  { %2545 = vmatprep.subr.bf16.mxu1 %v4018_v56  ;;  %v1655_v24 = vcombine.low %v1633_v0, %v1640_v40  ;;  %v1689_v39 = vrot.slane %v4040_v7, %v3088_v51  ;;  %v3489_v6 = vrot.slane %v1607_v5, %v3088_v51  ;;  %v1573_v18 = vcombine.low %v3476_v55, %v3479_v50  ;;  %v2602_v5 = vld [vmem:[%s3970_s9 + $0x10] sm:$0xff]  }
 0x1a2   :  { %v1656_v23 = vcombine.low %v1647_v44, %v4041_v13  ;;  %v1696_v46 = vrot.slane %v4044_v52, %v3088_v51  ;;  %v4051_v37 = vcombine.low %v4049_v61, %v4050_v59  ;;  %v3525_v29 = vrot.slane %v1754_v60, %v3088_v51  ;;  %2468 = vmatpush3.bf16.msra.mxu0 %v2600_v33 }
 0x1a3   :  { %2490 = vmatmul.mubr.msk.bf16.gmra.mxu1 %vm157_vm0, %v3393_v12  ;;  %v3502_v11 = vrot.slane %v1655_v24, %v3088_v51  ;;  %v1704_v1 = vcombine.low %v1682_v27, %v1689_v39  ;;  %v1622_v15 = vcombine.low %v3486_v17, %v3489_v6  ;;  %2497 = vmatprep.subr.bf16.mxu0 %v4018_v56 }
 0x1a4   :  { %2493 = vmatprep.mubr.msk.bf16.mxu1 %vm2678_vm1, %v4018_v56  ;;  %v3511_v38 = vrot.slane %v1656_v23, %v3088_v51  ;;  %v1705_v9 = vcombine.low %v1696_v46, %v4048_v43  ;;  %v1738_v20 = vrot.slane %v4051_v37, %v3088_v51  ;;  %v2603_v46 = vld [vmem:[%s3970_s9 + $0x28] sm:$0xff]  }
 0x1a5   :  { %v3519_v14 = vrot.slane %v1704_v1, %v3088_v51 }
 0x1a6   :  { %v1671_v30 = vcombine.low %v3502_v11, %v3511_v38  ;;  %v3531_v31 = vrot.slane %v1705_v9, %v3088_v51 }
 0x1a8   :  { %v1720_v36 = vcombine.low %v3519_v14, %v3531_v31 }
 0x1ab   :  { %2494 = vmatmul.mubr.msk.bf16.gmra.mxu1 %vm157_vm0, %v3402_v48 }
 0x1ac   :  { %2517 = vmatprep.mubr.msk.bf16.mxu1 %vm2678_vm1, %v4018_v56 }
 0x1b3   :  { %2518 = vmatmul.mubr.msk.bf16.vlgmr.msra.gmra.mxu1 %vm157_vm0, %v3373_v26 }
 0x1b4   :  { %2521 = vmatprep.mubr.msk.bf16.mxu1 %vm2678_vm1, %v4018_v56  ;;  %2546 = vmatpush3.bf16.msra.mxu1 %v2597_v28  ;;  %v4047_v28 = vcombine.low %v4045_v54, %v4046_v21  ;;  %v2604_v54 = vld [vmem:[%s3970_s9 + $0x20] sm:$0xff]  }
 0x1b5   :  { %2547 = vmatprep.subr.bf16.mxu1 %v4018_v56 }
 0x1b8   :  { %2548 = vmatpush3.bf16.msra.mxu1 %v2598_v41  ;;  %v1731_v41 = vrot.slane %v4047_v28, %v3088_v51 }
 0x1ba   :  { %v1753_v32 = vcombine.low %v1731_v41, %v1738_v20 }
 0x1bb   :  { %2522 = vmatmul.mubr.msk.bf16.gmra.mxu1 %vm157_vm0, %v3393_v12 }
 0x1bc   :  { %2525 = vmatprep.mubr.msk.bf16.mxu1 %vm2678_vm1, %v4018_v56  ;;  %v3541_v57 = vrot.slane %v1753_v32, %v3088_v51 }
 0x1be   :  { %v1769_v60 = vcombine.low %v3541_v57, %v3525_v29 }
 0x1c3   :  { %2526 = vmatmul.mubr.msk.bf16.gmra.mxu1 %vm157_vm0, %v3402_v48 }
 0x1c4   :  { %2549 = vmatprep.mubr.msk.bf16.mxu1 %vm2678_vm1, %v4018_v56 }
 0x1cb   :  { %2550 = vmatmul.mubr.msk.bf16.vlgmr.msra.gmra.mxu1 %vm157_vm0, %v3373_v26  ;;  %v2320_v26 = vld [vmem:[%s3971_s8] ss:$0 sm:$0xff] }
 0x1cc   :  { %2553 = vmatprep.mubr.msk.bf16.mxu1 %vm2678_vm1, %v4018_v56 }
 0x1d3   :  { %2554 = vmatmul.mubr.msk.bf16.gmra.mxu1 %vm157_vm0, %v3393_v12  ;;  %v2601_v12 = vld [vmem:[%s3970_s9 + $0x18] sm:$0xff]  }
 0x1d4   :  { %2557 = vmatprep.mubr.msk.bf16.mxu1 %vm2678_vm1, %v4018_v56 }
 0x1db   :  { %2558 = vmatmul.mubr.msk.bf16.gmra.mxu1 %vm157_vm0, %v3402_v48 }
 0x243   :  { %v423_v34 = vpop.f32.mrf.mxu1 }
 0x244   :  { %v424_v53 = vadd.f32 %v2320_v26, %v423_v34 }
 0x245   :  { %v2455_v35 = vpop.f32.mrf.mxu1 }
 0x246   :  { %v445_v0 = vmax.f32 %v424_v53, 0.0 }
 0x247   :  { %v426_v25 = vpop.f32.mrf.mxu1 }
 0x248   :  { %v427_v62 = vadd.f32 %v2320_v26, %v426_v25 }
 0x249   :  { %v2456_v63 = vpop.f32.mrf.mxu1 }
 0x24a   :  { %v446_v2 = vmax.f32 %v427_v62, 0.0 }
 0x24b   :  { %v431_v3 = vpop.f32.mrf.mxu1 }
 0x24c   :  { %v715_v22 = vpack.c.bf16 %v446_v2, %v445_v0  ;;  %v432_v48 = vadd.f32 %v2320_v26, %v431_v3 }
 0x24d   :  { %v2459_v40 = vpop.f32.mrf.mxu1 }
 0x24e   :  { %2470 = vmatmul.mubr.msk.bf16.vlgmr.msra.gmra.mxu0 %vm157_vm0, %v715_v22  ;;  %v447_v49 = vmax.f32 %v432_v48, 0.0 }
 0x24f   :  { %2498 = vmatpush3.bf16.msra.mxu0 %v2601_v12  ;;  %v434_v4 = vpop.f32.mrf.mxu1  ;;  %2473 = vmatprep.mubr.msk.bf16.mxu0 %vm2678_vm1, %v4018_v56 }
 0x250   :  { %v435_v8 = vadd.f32 %v2320_v26, %v434_v4  ;;  %2499 = vmatprep.subr.bf16.mxu0 %v4018_v56 }
 0x251   :  { %v2460_v10 = vpop.f32.mrf.mxu1 }
 0x252   :  { %v448_v44 = vmax.f32 %v435_v8, 0.0 }
 0x253   :  { %v439_v47 = vpop.f32.mrf.mxu1  ;;  %2500 = vmatpush3.bf16.msra.mxu0 %v2602_v5 }
 0x254   :  { %v716_v45 = vpack.c.bf16 %v448_v44, %v447_v49  ;;  %v440_v58 = vadd.f32 %v2320_v26, %v439_v47  ;;  %2529 = vmatprep.subr.bf16.mxu0 %v4018_v56  ;;  %v2328_v44 = vld [vmem:[%s3972_s11] ss:$0 sm:$0xff] }
 0x255   :  { %v2463_v27 = vpop.f32.mrf.mxu1 }
 0x256   :  { %2474 = vmatmul.mubr.msk.bf16.gmra.mxu0 %vm157_vm0, %v716_v45  ;;  %v449_v7 = vmax.f32 %v440_v58, 0.0  ;;  %v2339_v58 = vld [vmem:[%s3973_s12] ss:$0 sm:$0xff] }
 0x257   :  { %v442_v24 = vpop.f32.mrf.mxu1  ;;  %2477 = vmatprep.mubr.msk.bf16.mxu0 %vm2678_vm1, %v4018_v56 }
 0x258   :  { %v717_v23 = vpack.c.bf16 %v449_v7, %v449_v7 }
 0x259   :  { %v2464_v39 = vpop.f32.mrf.mxu1 }
 0x25b   :  { %v3571_v13 = vpop.f32.mrf.mxu1 }
 0x25d   :  { %v2487_v16 = vpop.f32.mrf.mxu1 }
 0x25e   :  { %2478 = vmatmul.mubr.msk.bf16.gmra.mxu0 %vm157_vm0, %v717_v23 }
 0x25f   :  { %2501 = vmatprep.mubr.msk.bf16.mxu0 %vm2678_vm1, %v4018_v56  ;;  %v3576_v19 = vpop.f32.mrf.mxu1 }
 0x261   :  { %v2488_v52 = vpop.f32.mrf.mxu1 }
 0x263   :  { %v3581_v42 = vpop.f32.mrf.mxu1 }
 0x265   :  { %v2491_v1 = vpop.f32.mrf.mxu1 }
 0x266   :  { %2502 = vmatmul.mubr.msk.bf16.vlgmr.msra.gmra.mxu0 %vm157_vm0, %v715_v22 }
 0x267   :  { %2530 = vmatpush3.bf16.msra.mxu0 %v2603_v46  ;;  %2505 = vmatprep.mubr.msk.bf16.mxu0 %vm2678_vm1, %v4018_v56  ;;  %v3589_v21 = vpop.f32.mrf.mxu1 }
 0x268   :  { %2531 = vmatprep.subr.bf16.mxu0 %v4018_v56 }
 0x269   :  { %v2492_v28 = vpop.f32.mrf.mxu1 }
 0x26b   :  { %2532 = vmatpush3.bf16.msra.mxu0 %v2604_v54  ;;  %v3592_v41 = vpop.f32.mrf.mxu1 }
 0x26c   :  { %2561 = vmatprep.subr.bf16.mxu0 %v4018_v56 }
 0x26d   :  { %v2495_v43 = vpop.f32.mrf.mxu1 }
 0x26e   :  { %2506 = vmatmul.mubr.msk.bf16.gmra.mxu0 %vm157_vm0, %v716_v45 }
 0x26f   :  { %2509 = vmatprep.mubr.msk.bf16.mxu0 %vm2678_vm1, %v4018_v56  ;;  %v1075_v9 = vpop.f32.mrf.mxu1 }
 0x271   :  { %v2496_v61 = vpop.f32.mrf.mxu1 }
 0x273   :  { %v3598_v59 = vpop.f32.mrf.mxu1 }
 0x275   :  { %v2519_v37 = vpop.f32.mrf.mxu1 }
 0x276   :  { %2510 = vmatmul.mubr.msk.bf16.gmra.mxu0 %vm157_vm0, %v717_v23 }
 0x277   :  { %2533 = vmatprep.mubr.msk.bf16.mxu0 %vm2678_vm1, %v4018_v56  ;;  %v3603_v20 = vpop.f32.mrf.mxu1 }
 0x279   :  { %v2520_v32 = vpop.f32.mrf.mxu1 }
 0x27b   :  { %v3605_v33 = vpop.f32.mrf.mxu1 }
 0x27d   :  { %v2523_v26 = vpop.f32.mrf.mxu1 }
 0x27e   :  { %2534 = vmatmul.mubr.msk.bf16.vlgmr.msra.gmra.mxu0 %vm157_vm0, %v715_v22 }
 0x27f   :  { %2537 = vmatprep.mubr.msk.bf16.mxu0 %vm2678_vm1, %v4018_v56  ;;  %v3610_v34 = vpop.f32.mrf.mxu1 }
 0x281   :  { %v2524_v35 = vpop.f32.mrf.mxu1 }
 0x283   :  { %v3612_v53 = vpop.f32.mrf.mxu1 }
 0x285   :  { %v2527_v25 = vpop.f32.mrf.mxu1 }
 0x286   :  { %2538 = vmatmul.mubr.msk.bf16.gmra.mxu0 %vm157_vm0, %v716_v45 }
 0x287   :  { %2541 = vmatprep.mubr.msk.bf16.mxu0 %vm2678_vm1, %v4018_v56  ;;  %v1263_v62 = vpop.f32.mrf.mxu1 }
 0x289   :  { %v2528_v63 = vpop.f32.mrf.mxu1 }
 0x28b   :  { %v3617_v0 = vpop.f32.mrf.mxu1 }
 0x28d   :  { %v2551_v2 = vpop.f32.mrf.mxu1 }
 0x28e   :  { %2542 = vmatmul.mubr.msk.bf16.gmra.mxu0 %vm157_vm0, %v717_v23 }
 0x28f   :  { %v3620_v3 = vpop.f32.mrf.mxu1  ;;  %2565 = vmatprep.mubr.msk.bf16.mxu0 %vm2678_vm1, %v4018_v56 }
 0x291   :  { %v2552_v12 = vpop.f32.mrf.mxu1 }
 0x293   :  { %v3624_v22 = vpop.f32.mrf.mxu1 }
 0x295   :  { %v2555_v40 = vpop.f32.mrf.mxu1 }
 0x297   :  { %v3626_v48 = vpop.f32.mrf.mxu1 }
 0x299   :  { %v2556_v4 = vpop.f32.mrf.mxu1 }
 0x29b   :  { %v3628_v5 = vpop.f32.mrf.mxu1 }
 0x29d   :  { %v2559_v8 = vpop.f32.mrf.mxu1 }
 0x29f   :  { %v1457_v10 = vpop.f32.mrf.mxu1 }
 0x2a0   :  { %v2345_v10 = vld [vmem:[%s3972_s11 + $0x1] ss:$0 sm:$0xff] }
 0x2a1   :  { %v2560_v49 = vpop.f32.mrf.mxu1 }
 0x30e   :  { %v779_v47 = vpop.f32.mrf.mxu0 }
 0x30f   :  { %v780_v45 = vadd.f32 %v2328_v44, %v779_v47 }
 0x310   :  { %v2471_v27 = vpop.f32.mrf.mxu0 }
 0x311   :  { %v1078_v24 = vadd.f32 %v3571_v13, %v780_v45 }
 0x312   :  { %v782_v7 = vpop.f32.mrf.mxu0 }
 0x313   :  { %v1089_v39 = vadd.f32 %v2339_v58, %v1078_v24  ;;  %v783_v23 = vadd.f32 %v2328_v44, %v782_v7 }
 0x314   :  { %v2472_v16 = vpop.f32.mrf.mxu0 }
 0x315   :  { %v1079_v52 = vadd.f32 %v3576_v19, %v783_v23  ;;  %v2340_v1 = vmul.f32 -1.442695, %v1089_v39 }
 0x316   :  { %v787_v46 = vpop.f32.mrf.mxu0 }
 0x317   :  { %v1090_v54 = vadd.f32 %v2339_v58, %v1079_v52  ;;  %v788_v28 = vadd.f32 %v2328_v44, %v787_v46  ;;  %2617 = vpow2.f32 %v2340_v1 }
 0x318   :  { %v2475_v43 = vpop.f32.mrf.mxu0 }
 0x319   :  { %v1080_v9 = vadd.f32 %v3581_v42, %v788_v28  ;;  %v2341_v37 = vmul.f32 -1.442695, %v1090_v54 }
 0x31a   :  { %v790_v61 = vpop.f32.mrf.mxu0 }
 0x31b   :  { %v1091_v32 = vadd.f32 %v2339_v58, %v1080_v9  ;;  %v791_v26 = vadd.f32 %v2328_v44, %v790_v61  ;;  %2619 = vpow2.f32 %v2341_v37 }
 0x31c   :  { %v2476_v35 = vpop.f32.mrf.mxu0 }
 0x31d   :  { %v1081_v13 = vadd.f32 %v3589_v21, %v791_v26  ;;  %v2342_v25 = vmul.f32 -1.442695, %v1091_v32 }
 0x31e   :  { %v795_v62 = vpop.f32.mrf.mxu0 }
 0x31f   :  { %v1092_v63 = vadd.f32 %v2339_v58, %v1081_v13  ;;  %v796_v19 = vadd.f32 %v2328_v44, %v795_v62  ;;  %2621 = vpow2.f32 %v2342_v25  ;;  %v2356_v44 = vld [vmem:[%s3973_s12 + $0x1] ss:$0 sm:$0xff] }
 0x320   :  { %v2479_v2 = vpop.f32.mrf.mxu0 }
 0x321   :  { %v1082_v12 = vadd.f32 %v3592_v41, %v796_v19  ;;  %v2343_v40 = vmul.f32 -1.442695, %v1092_v63 }
 0x322   :  { %v798_v4 = vpop.f32.mrf.mxu0 }
 0x323   :  { %v1093_v42 = vadd.f32 %v2339_v58, %v1082_v12  ;;  %2623 = vpow2.f32 %v2343_v40 }
 0x324   :  { %v2480_v8 = vpop.f32.mrf.mxu0  ;;  %v2618_v45 = vpop.eup %2617 }
 0x325   :  { %v2344_v49 = vmul.f32 -1.442695, %v1093_v42  ;;  %v1109_v58 = vadd.f32 1.0, %v2618_v45 }
 0x326   :  { %v1176_v21 = vpop.f32.mrf.mxu0 }
 0x327   :  { %v1177_v47 = vadd.f32 %v2345_v10, %v1176_v21  ;;  %2625 = vpow2.f32 %v2344_v49  ;;  %v2368_v49 = vld [vmem:[%s3973_s12 + $0x2] ss:$0 sm:$0xff] }
 0x328   :  { %v2503_v27 = vpop.f32.mrf.mxu0  ;;  %v2620_v23 = vpop.eup %2619  ;;  %2627 = vrcp.f32 %v1109_v58 }
 0x329   :  { %v1266_v41 = vadd.f32 %v3598_v59, %v1177_v47  ;;  %v1110_v28 = vadd.f32 1.0, %v2620_v23 }
 0x32a   :  { %v1179_v24 = vpop.f32.mrf.mxu0 }
 0x32b   :  { %v1277_v7 = vadd.f32 %v2356_v44, %v1266_v41  ;;  %v1180_v39 = vadd.f32 %v2345_v10, %v1179_v24  ;;  %v2362_v41 = vld [vmem:[%s3972_s11 + $0x2] ss:$0 sm:$0xff]  ;;  %v1439_v24 = vadd.f32 %v2368_v49, %v3617_v0 }
 0x32c   :  { %v2504_v16 = vpop.f32.mrf.mxu0  ;;  %v2622_v54 = vpop.eup %2621 }
 0x32d   :  { %v2357_v52 = vmul.f32 -1.442695, %v1277_v7  ;;  %v1267_v46 = vadd.f32 %v3603_v20, %v1180_v39  ;;  %v1111_v32 = vadd.f32 1.0, %v2622_v54 }
 0x32e   :  { %v1184_v1 = vpop.f32.mrf.mxu0 }
 0x32f   :  { %v1278_v43 = vadd.f32 %v2356_v44, %v1267_v46  ;;  %v1185_v9 = vadd.f32 %v2345_v10, %v1184_v1  ;;  %2629 = vpow2.f32 %v2357_v52  ;;  %v1442_v46 = vadd.f32 %v2368_v49, %v3620_v3 }
 0x330   :  { %v2507_v61 = vpop.f32.mrf.mxu0  ;;  %v2624_v35 = vpop.eup %2623  ;;  %2631 = vrcp.f32 %v1110_v28 }
 0x331   :  { %v2358_v37 = vmul.f32 -1.442695, %v1278_v43  ;;  %v1268_v59 = vadd.f32 %v3605_v33, %v1185_v9  ;;  %v1112_v19 = vadd.f32 1.0, %v2624_v35 }
 0x332   :  { %v1187_v26 = vpop.f32.mrf.mxu0 }
 0x333   :  { %v1279_v13 = vadd.f32 %v2356_v44, %v1268_v59  ;;  %v1188_v25 = vadd.f32 %v2345_v10, %v1187_v26  ;;  %2633 = vpow2.f32 %v2358_v37  ;;  %v1447_v59 = vadd.f32 %v2368_v49, %v3624_v22 }
 0x334   :  { %v2508_v62 = vpop.f32.mrf.mxu0  ;;  %2635 = vrcp.f32 %v1111_v32  ;;  %v2626_v12 = vpop.eup %2625 }
 0x335   :  { %v2359_v20 = vmul.f32 -1.442695, %v1279_v13  ;;  %v1269_v63 = vadd.f32 %v3610_v34, %v1188_v25  ;;  %v1113_v21 = vadd.f32 1.0, %v2626_v12  ;;  %v2628_v45 = vpop.eup %2627 }
 0x336   :  { %v1192_v2 = vpop.f32.mrf.mxu0  ;;  %v1460_v23 = vmul.f32 %v2628_v45, %v1439_v24 }
 0x337   :  { %2637 = vpow2.f32 %v2359_v20  ;;  %v1280_v40 = vadd.f32 %v2356_v44, %v1269_v63  ;;  %v1193_v4 = vadd.f32 %v2345_v10, %v1192_v2  ;;  %v1450_v63 = vadd.f32 %v2368_v49, %v3626_v48 }
 0x338   :  { %v2511_v42 = vpop.f32.mrf.mxu0  ;;  %2639 = vrcp.f32 %v1112_v19 }
 0x339   :  { %v2360_v33 = vmul.f32 -1.442695, %v1280_v40  ;;  %v1270_v8 = vadd.f32 %v3612_v53, %v1193_v4 }
 0x33a   :  { %v1195_v47 = vpop.f32.mrf.mxu0 }
 0x33b   :  { %2641 = vpow2.f32 %v2360_v33  ;;  %v1281_v34 = vadd.f32 %v2356_v44, %v1270_v8 }
 0x33c   :  { %v2512_v27 = vpop.f32.mrf.mxu0  ;;  %v2630_v10 = vpop.eup %2629  ;;  %2643 = vrcp.f32 %v1113_v21  ;;  %v1455_v21 = vadd.f32 %v2368_v49, %v3628_v5 }
 0x33d   :  { %v2361_v58 = vmul.f32 -1.442695, %v1281_v34  ;;  %v1297_v53 = vadd.f32 1.0, %v2630_v10  ;;  %v2632_v16 = vpop.eup %2631 }
 0x33e   :  { %v1364_v7 = vpop.f32.mrf.mxu0  ;;  %v1461_v0 = vmul.f32 %v2632_v16, %v1442_v46 }
 0x33f   :  { %2645 = vpow2.f32 %v2361_v58  ;;  %v1365_v39 = vadd.f32 %v2362_v41, %v1364_v7 }
 0x340   :  { %2647 = vrcp.f32 %v1297_v53  ;;  %v2535_v52 = vpop.f32.mrf.mxu0  ;;  %v2634_v44 = vpop.eup %2633 }
 0x341   :  { %v1465_v1 = vadd.f32 %v1460_v23, %v1365_v39  ;;  %v1298_v54 = vadd.f32 1.0, %v2634_v44  ;;  %v2636_v43 = vpop.eup %2635 }
 0x342   :  { %v1367_v28 = vpop.f32.mrf.mxu0  ;;  %v1462_v62 = vmul.f32 %v2636_v43, %v1447_v59 }
 0x343   :  { %2649 = vtanh.f32 %v1465_v1  ;;  %v1368_v9 = vadd.f32 %v2362_v41, %v1367_v28 }
 0x344   :  { %v2638_v61 = vpop.eup %2637  ;;  %2651 = vrcp.f32 %v1298_v54  ;;  %v2536_v37 = vpop.f32.mrf.mxu0 }
 0x345   :  { %v1299_v32 = vadd.f32 1.0, %v2638_v61  ;;  %v1466_v26 = vadd.f32 %v1461_v0, %v1368_v9  ;;  %v2640_v13 = vpop.eup %2639 }
 0x346   :  { %v1372_v35 = vpop.f32.mrf.mxu0  ;;  %v1463_v42 = vmul.f32 %v2640_v13, %v1450_v63 }
 0x347   :  { %2653 = vrcp.f32 %v1299_v32  ;;  %v1373_v25 = vadd.f32 %v2362_v41, %v1372_v35 }
 0x348   :  { %v2642_v3 = vpop.eup %2641  ;;  %2655 = vtanh.f32 %v1466_v26  ;;  %v2539_v20 = vpop.f32.mrf.mxu0 }
 0x349   :  { %v1300_v19 = vadd.f32 1.0, %v2642_v3  ;;  %v1467_v2 = vadd.f32 %v1462_v62, %v1373_v25  ;;  %v2644_v40 = vpop.eup %2643 }
 0x34a   :  { %v1375_v12 = vpop.f32.mrf.mxu0  ;;  %v1464_v10 = vmul.f32 %v2644_v40, %v1455_v21 }
 0x34b   :  { %v1376_v4 = vadd.f32 %v2362_v41, %v1375_v12  ;;  %2657 = vtanh.f32 %v1467_v2 }
 0x34c   :  { %v2646_v33 = vpop.eup %2645  ;;  %v2540_v22 = vpop.f32.mrf.mxu0  ;;  %2659 = vrcp.f32 %v1300_v19 }
 0x34d   :  { %v2648_v8 = vpop.eup %2647  ;;  %v1468_v47 = vadd.f32 %v1463_v42, %v1376_v4  ;;  %v1301_v34 = vadd.f32 1.0, %v2646_v33 }
 0x34e   :  { %v1380_v45 = vpop.f32.mrf.mxu0  ;;  %v1475_v24 = vsub.f32 1.0, %v2648_v8  ;;  %v1775_v23 = vmul.f32 %v2648_v8, %v1573_v18 }
 0x34f   :  { %v1381_v27 = vadd.f32 %v2362_v41, %v1380_v45  ;;  %2661 = vtanh.f32 %v1468_v47 }
 0x350   :  { %v2650_v48 = vpop.eup %2649  ;;  %v2543_v58 = vpop.f32.mrf.mxu0  ;;  %2663 = vrcp.f32 %v1301_v34 }
 0x351   :  { %v2652_v53 = vpop.eup %2651  ;;  %v1469_v7 = vadd.f32 %v1464_v10, %v1381_v27  ;;  %v1480_v39 = vmul.f32 %v2650_v48, %v1475_v24 }
 0x352   :  { %v1383_v16 = vpop.f32.mrf.mxu0  ;;  %v1476_v41 = vsub.f32 1.0, %v2652_v53  ;;  %v1776_v18 = vmul.f32 %v2652_v53, %v1622_v15 }
 0x353   :  { %v3666_v5 = vadd.f32 %v1775_v23, %v1480_v39  ;;  %2665 = vtanh.f32 %v1469_v7 }
 0x354   :  { %v2654_v49 = vpop.eup %2653  ;;  %v2544_v52 = vpop.f32.mrf.mxu0 }
 0x355   :  { %v2656_v44 = vpop.eup %2655  ;;  %v1785_v46 = vsel %vm157_vm0, %v3666_v5, 0.0  ;;  %v1978_v1 = vcombine.high %v3666_v5, %v3666_v5  ;;  %v1985_v54 = vrot.slane %v3666_v5, %v3088_v51  ;;  %v1800_v55 = vmul.f32 %v3666_v5, %v3666_v5 }
 0x356   :  { %1786 = vadd.xlane.f32.xlu1 %v1785_v46  ;;  %v1481_v50 = vmul.f32 %v2656_v44, %v1476_v41  ;;  %v1477_v37 = vsub.f32 1.0, %v2654_v49  ;;  %v1777_v59 = vmul.f32 %v2654_v49, %v1671_v30 }
 0x357   :  { %v1992_v28 = vrot.slane %v1978_v1, %v3088_v51  ;;  %v1993_v43 = vcombine.high %v1985_v54, %v1985_v54  ;;  %v2001_v9 = vrot.slane %v1985_v54, %v3088_v51  ;;  %v1805_v0 = vsel %vm157_vm0, %v1800_v55, 0.0 }
 0x358   :  { %v3682_v61 = vadd.f32 %v1776_v18, %v1481_v50  ;;  %v2658_v32 = vpop.eup %2657 }
 0x359   :  { %v1994_v26 = vcombine.high %v1992_v28, %v1992_v28  ;;  %v2008_v35 = vrot.slane %v1992_v28, %v3088_v51  ;;  %v2015_v17 = vrot.slane %v1993_v43, %v3088_v51  ;;  %v2023_v6 = vcombine.high %v2001_v9, %v2001_v9  ;;  %2264 = vst.msk [vmem:[%s3974_s18] sm:$0x1] %vm2263_vm10, %v2001_v9  ;;  %v2660_v15 = vpop.eup %2659 }
 0x35a   :  { %1806 = vadd.xlane.f32.xlu1 %v1805_v0  ;;  %v1788_v13 = vsel %vm157_vm0, %v3682_v61, 0.0  ;;  %v2027_v11 = vcombine.high %v3682_v61, %v3682_v61  ;;  %v2034_v38 = vrot.slane %v3682_v61, %v3088_v51  ;;  %v1801_v30 = vmul.f32 %v3682_v61, %v3682_v61 }
 0x35b   :  { %v2022_v25 = vrot.slane %v1994_v26, %v3088_v51  ;;  %v2024_v62 = vcombine.high %v2008_v35, %v2008_v35  ;;  %v2025_v3 = vcombine.high %v2015_v17, %v2015_v17  ;;  %2265 = vst.msk [vmem:[%s3974_s18 + $0x1] sm:$0x1] %vm2263_vm10, %v2015_v17  ;;  %2266 = vst.msk [vmem:[%s3974_s18 + $0x2] sm:$0x1] %vm2263_vm10, %v2023_v6  ;;  %1789 = vadd.xlane.f32.xlu0 %v1788_v13 }
 0x35c   :  { %2268 = vst.msk [vmem:[%s3974_s18 + $0x4] sm:$0x1] %vm2263_vm10, %v2008_v35  ;;  %v1482_v20 = vmul.f32 %v2658_v32, %v1477_v37  ;;  %v2041_v63 = vrot.slane %v2027_v11, %v3088_v51  ;;  %v2042_v19 = vcombine.high %v2034_v38, %v2034_v38  ;;  %v2050_v2 = vrot.slane %v2034_v38, %v3088_v51  ;;  %v2662_v40 = vpop.eup %2661 }
 0x35d   :  { %v1808_v12 = vsel %vm157_vm0, %v1801_v30, 0.0  ;;  %v2026_v4 = vcombine.high %v2022_v25, %v2022_v25  ;;  %2267 = vst.msk [vmem:[%s3974_s18 + $0x3] sm:$0x1] %vm2263_vm10, %v2025_v3  ;;  %2269 = vst.msk [vmem:[%s3974_s18 + $0x5] sm:$0x1] %vm2263_vm10, %v2022_v25  ;;  %v1478_v33 = vsub.f32 1.0, %v2660_v15  ;;  %v1778_v22 = vmul.f32 %v2660_v15, %v1720_v36  ;;  %v2664_v45 = vpop.eup %2663 }
 0x35e   :  { %2270 = vst.msk [vmem:[%s3974_s18 + $0x6] sm:$0x1] %vm2263_vm10, %v2024_v62  ;;  %v3729_v42 = vadd.f32 %v1777_v59, %v1482_v20  ;;  %v2043_v8 = vcombine.high %v2041_v63, %v2041_v63  ;;  %v2057_v21 = vrot.slane %v2041_v63, %v3088_v51  ;;  %v2064_v47 = vrot.slane %v2042_v19, %v3088_v51 }
 0x35f   :  { %v2072_v34 = vcombine.high %v2050_v2, %v2050_v2  ;;  %2272 = vst.msk [vmem:[%s3974_s18 + $0x8] sm:$0x1] %vm2263_vm10, %v2050_v2  ;;  %1809 = vadd.xlane.f32.xlu1 %v1808_v12  ;;  %2271 = vst.msk [vmem:[%s3974_s18 + $0x7] sm:$0x1] %vm2263_vm10, %v2026_v4  ;;  %v1483_v27 = vmul.f32 %v2662_v40, %v1478_v33  ;;  %v1479_v41 = vsub.f32 1.0, %v2664_v45 }
 0x360   :  { %v1791_v14 = vsel %vm157_vm0, %v3729_v42, 0.0  ;;  %v2076_v31 = vcombine.high %v3729_v42, %v3729_v42  ;;  %v2083_v36 = vrot.slane %v3729_v42, %v3088_v51  ;;  %v2071_v10 = vrot.slane %v2043_v8, %v3088_v51  ;;  %2273 = vst.msk [vmem:[%s3974_s18 + $0x9] sm:$0x1] %vm2263_vm10, %v2064_v47  ;;  %2276 = vst.msk [vmem:[%s3974_s18 + $0xc] sm:$0x1] %vm2263_vm10, %v2057_v21  ;;  %v2666_v53 = vpop.eup %2665 }
 0x361   :  { %v2073_v24 = vcombine.high %v2057_v21, %v2057_v21  ;;  %v2074_v48 = vcombine.high %v2064_v47, %v2064_v47  ;;  %2274 = vst.msk [vmem:[%s3974_s18 + $0xa] sm:$0x1] %vm2263_vm10, %v2072_v34  ;;  %v1802_v58 = vmul.f32 %v3729_v42, %v3729_v42  ;;  %v3767_v16 = vadd.f32 %v1778_v22, %v1483_v27 }
 0x362   :  { %v2090_v7 = vrot.slane %v2076_v31, %v3088_v51  ;;  %v2091_v39 = vcombine.high %v2083_v36, %v2083_v36  ;;  %v2099_v23 = vrot.slane %v2083_v36, %v3088_v51  ;;  %v2075_v49 = vcombine.high %v2071_v10, %v2071_v10  ;;  %2277 = vst.msk [vmem:[%s3974_s18 + $0xd] sm:$0x1] %vm2263_vm10, %v2071_v10 }
 0x363   :  { %2275 = vst.msk [vmem:[%s3974_s18 + $0xb] sm:$0x1] %vm2263_vm10, %v2074_v48  ;;  %2278 = vst.msk [vmem:[%s3974_s18 + $0xe] sm:$0x1] %vm2263_vm10, %v2073_v24  ;;  %1792 = vadd.xlane.f32.xlu1 %v1791_v14  ;;  %v1811_v52 = vsel %vm157_vm0, %v1802_v58, 0.0  ;;  %v1779_v44 = vmul.f32 %v2664_v45, %v1769_v60  ;;  %v1794_v29 = vsel %vm157_vm0, %v3767_v16, 0.0  ;;  %v2125_v57 = vcombine.high %v3767_v16, %v3767_v16 }
 0x364   :  { %v2092_v46 = vcombine.high %v2090_v7, %v2090_v7  ;;  %v2106_v1 = vrot.slane %v2090_v7, %v3088_v51  ;;  %v2113_v54 = vrot.slane %v2091_v39, %v3088_v51  ;;  %v2121_v55 = vcombine.high %v2099_v23, %v2099_v23  ;;  %2280 = vst.msk [vmem:[%s3974_s18 + $0x10] sm:$0x1] %vm2263_vm10, %v2099_v23  ;;  %v2606_v14 = vld [vmem:[%s3975_s15] sm:$0xff]  }
 0x365   :  { %2279 = vst.msk [vmem:[%s3974_s18 + $0xf] sm:$0x1] %vm2263_vm10, %v2075_v49  ;;  %v2132_v60 = vrot.slane %v3767_v16, %v3088_v51  ;;  %v1803_v50 = vmul.f32 %v3767_v16, %v3767_v16  ;;  %1795 = vadd.xlane.f32.xlu0 %v1794_v29  ;;  %v1484_v9 = vmul.f32 %v2666_v53, %v1479_v41 }
 0x366   :  { %v2120_v18 = vrot.slane %v2092_v46, %v3088_v51  ;;  %v2122_v28 = vcombine.high %v2106_v1, %v2106_v1  ;;  %v2123_v43 = vcombine.high %v2113_v54, %v2113_v54  ;;  %2281 = vst.msk [vmem:[%s3974_s18 + $0x11] sm:$0x1] %vm2263_vm10, %v2113_v54  ;;  %2282 = vst.msk [vmem:[%s3974_s18 + $0x12] sm:$0x1] %vm2263_vm10, %v2121_v55 }
 0x367   :  { %2284 = vst.msk [vmem:[%s3974_s18 + $0x14] sm:$0x1] %vm2263_vm10, %v2106_v1  ;;  %v2139_v0 = vrot.slane %v2125_v57, %v3088_v51  ;;  %v2140_v37 = vcombine.high %v2132_v60, %v2132_v60  ;;  %v2148_v59 = vrot.slane %v2132_v60, %v3088_v51  ;;  %1812 = vadd.xlane.f32.xlu1 %v1811_v52  ;;  %v1814_v26 = vsel %vm157_vm0, %v1803_v50, 0.0 }
 0x368   :  { %v2124_v32 = vcombine.high %v2120_v18, %v2120_v18  ;;  %2283 = vst.msk [vmem:[%s3974_s18 + $0x13] sm:$0x1] %vm2263_vm10, %v2123_v43  ;;  %2285 = vst.msk [vmem:[%s3974_s18 + $0x15] sm:$0x1] %vm2263_vm10, %v2120_v18  ;;  %v3831_v35 = vadd.f32 %v1779_v44, %v1484_v9 }
 0x369   :  { %2286 = vst.msk [vmem:[%s3974_s18 + $0x16] sm:$0x1] %vm2263_vm10, %v2122_v28  ;;  %v2141_v17 = vcombine.high %v2139_v0, %v2139_v0  ;;  %v2155_v6 = vrot.slane %v2139_v0, %v3088_v51  ;;  %v2162_v15 = vrot.slane %v2140_v37, %v3088_v51  ;;  %v2170_v13 = vcombine.high %v2148_v59, %v2148_v59 }
 0x36a   :  { %2288 = vst.msk [vmem:[%s3974_s18 + $0x18] sm:$0x1] %vm2263_vm10, %v2148_v59  ;;  %2287 = vst.msk [vmem:[%s3974_s18 + $0x17] sm:$0x1] %vm2263_vm10, %v2124_v32  ;;  %1815 = vadd.xlane.f32.xlu0 %v1814_v26  ;;  %v1804_v11 = vmul.f32 %v3831_v35, %v3831_v35  ;;  %v2174_v38 = vcombine.high %v3831_v35, %v3831_v35  ;;  %v2181_v30 = vrot.slane %v3831_v35, %v3088_v51 }
 0x36b   :  { %v1797_v25 = vsel %vm157_vm0, %v3831_v35, 0.0  ;;  %v2169_v62 = vrot.slane %v2141_v17, %v3088_v51  ;;  %v2171_v3 = vcombine.high %v2155_v6, %v2155_v6  ;;  %v2172_v20 = vcombine.high %v2162_v15, %v2162_v15  ;;  %2289 = vst.msk [vmem:[%s3974_s18 + $0x19] sm:$0x1] %vm2263_vm10, %v2162_v15  ;;  %2290 = vst.msk [vmem:[%s3974_s18 + $0x1a] sm:$0x1] %vm2263_vm10, %v2170_v13 }
 0x36c   :  { %2292 = vst.msk [vmem:[%s3974_s18 + $0x1c] sm:$0x1] %vm2263_vm10, %v2155_v6  ;;  %1798 = vadd.xlane.f32.xlu1 %v1797_v25  ;;  %v2188_v63 = vrot.slane %v2174_v38, %v3088_v51  ;;  %v2189_v19 = vcombine.high %v2181_v30, %v2181_v30  ;;  %v2197_v2 = vrot.slane %v2181_v30, %v3088_v51  ;;  %v1817_v40 = vsel %vm157_vm0, %v1804_v11, 0.0  ;;  %v2374_v11 = vld [vmem:[%s3976_s13] ss:$0 sm:$0xff] }
 0x36d   :  { %v2173_v12 = vcombine.high %v2169_v62, %v2169_v62  ;;  %2291 = vst.msk [vmem:[%s3974_s18 + $0x1b] sm:$0x1] %vm2263_vm10, %v2172_v20  ;;  %2293 = vst.msk [vmem:[%s3974_s18 + $0x1d] sm:$0x1] %vm2263_vm10, %v2169_v62 }
 0x36e   :  { %2294 = vst.msk [vmem:[%s3974_s18 + $0x1e] sm:$0x1] %vm2263_vm10, %v2171_v3  ;;  %v2190_v4 = vcombine.high %v2188_v63, %v2188_v63  ;;  %v2204_v33 = vrot.slane %v2188_v63, %v3088_v51  ;;  %v2211_v22 = vrot.slane %v2189_v19, %v3088_v51  ;;  %v2219_v8 = vcombine.high %v2197_v2, %v2197_v2 }
 0x36f   :  { %2296 = vst.msk [vmem:[%s3974_s18 + $0x20] sm:$0x1] %vm2263_vm10, %v2197_v2  ;;  %1818 = vadd.xlane.f32.xlu0 %v1817_v40  ;;  %2295 = vst.msk [vmem:[%s3974_s18 + $0x1f] sm:$0x1] %vm2263_vm10, %v2173_v12 }
 0x370   :  { %v2218_v21 = vrot.slane %v2190_v4, %v3088_v51  ;;  %v2220_v47 = vcombine.high %v2204_v33, %v2204_v33  ;;  %v2221_v34 = vcombine.high %v2211_v22, %v2211_v22  ;;  %2297 = vst.msk [vmem:[%s3974_s18 + $0x21] sm:$0x1] %vm2263_vm10, %v2211_v22  ;;  %2298 = vst.msk [vmem:[%s3974_s18 + $0x22] sm:$0x1] %vm2263_vm10, %v2219_v8  ;;  %v2605_v51 = vld [vmem:[%s3975_s15 + $0x8] sm:$0xff]  }
 0x371   :  { %2300 = vst.msk [vmem:[%s3974_s18 + $0x24] sm:$0x1] %vm2263_vm10, %v2204_v33  ;;  %2562 = vmatpush3.bf16.msra.mxu0 %v2605_v51 }
 0x372   :  { %v2222_v45 = vcombine.high %v2218_v21, %v2218_v21  ;;  %2299 = vst.msk [vmem:[%s3974_s18 + $0x23] sm:$0x1] %vm2263_vm10, %v2221_v34  ;;  %2301 = vst.msk [vmem:[%s3974_s18 + $0x25] sm:$0x1] %vm2263_vm10, %v2218_v21  ;;  %2563 = vmatprep.subr.bf16.mxu0 %v4018_v56 }
 0x373   :  { %2302 = vst.msk [vmem:[%s3974_s18 + $0x26] sm:$0x1] %vm2263_vm10, %v2220_v47 }
 0x374   :  { %2303 = vst.msk [vmem:[%s3974_s18 + $0x27] sm:$0x1] %vm2263_vm10, %v2222_v45 }
 0x375   :  { %2564 = vmatpush3.bf16.msra.mxu0 %v2606_v14 }
 0x3df   :  { %v1787_v31 = vpop.xlane.xlu1 %1786 }
 0x3e0   :  { %v1820_v36 = vmul.f32 0.03125, %v1787_v31 }
 0x3e2   :  { %v1830_v10 = vmul.f32 %v1820_v36, %v1820_v36  ;;  %v1840_v59 = vsub.f32 %v3666_v5, %v1820_v36  ;;  %v2375_v5 = vld [vmem:[%s3977_s14] ss:$0 sm:$0xff] }
 0x3e3   :  { %v1807_v27 = vpop.xlane.xlu1 %1806 }
 0x3e4   :  { %v1825_v24 = vmul.f32 0.03125, %v1807_v27  ;;  %v1790_v48 = vpop.xlane.xlu0 %1789 }
 0x3e5   :  { %v1821_v58 = vmul.f32 0.03125, %v1790_v48 }
 0x3e6   :  { %v1835_v53 = vsub.f32 %v1825_v24, %v1830_v10 }
 0x3e7   :  { %v1831_v23 = vmul.f32 %v1821_v58, %v1821_v58  ;;  %v1841_v30 = vsub.f32 %v3682_v61, %v1821_v58 }
 0x3e8   :  { %v1810_v7 = vpop.xlane.xlu1 %1809  ;;  %v1845_v39 = vadd.f32 1e-05, %v1835_v53 }
 0x3e9   :  { %v1826_v49 = vmul.f32 0.03125, %v1810_v7 }
 0x3ea   :  { %2667 = vrsqrt.f32 %v1845_v39 }
 0x3eb   :  { %v1836_v52 = vsub.f32 %v1826_v49, %v1831_v23 }
 0x3ec   :  { %v1793_v41 = vpop.xlane.xlu1 %1792 }
 0x3ed   :  { %v1846_v44 = vadd.f32 1e-05, %v1836_v52  ;;  %v1822_v46 = vmul.f32 0.03125, %v1793_v41 }
 0x3ee   :  { %v1796_v1 = vpop.xlane.xlu0 %1795 }
 0x3ef   :  { %2669 = vrsqrt.f32 %v1846_v44  ;;  %v1823_v54 = vmul.f32 0.03125, %v1796_v1  ;;  %v1832_v29 = vmul.f32 %v1822_v46, %v1822_v46  ;;  %v1842_v12 = vsub.f32 %v3729_v42, %v1822_v46 }
 0x3f0   :  { %v1813_v55 = vpop.xlane.xlu1 %1812 }
 0x3f1   :  { %v1827_v57 = vmul.f32 0.03125, %v1813_v55  ;;  %v1833_v18 = vmul.f32 %v1823_v54, %v1823_v54  ;;  %v1843_v61 = vsub.f32 %v3767_v16, %v1823_v54 }
 0x3f3   :  { %v1837_v60 = vsub.f32 %v1827_v57, %v1832_v29  ;;  %v1816_v50 = vpop.xlane.xlu0 %1815 }
 0x3f4   :  { %v1828_v28 = vmul.f32 0.03125, %v1816_v50 }
 0x3f5   :  { %v1799_v43 = vpop.xlane.xlu1 %1798  ;;  %v1847_v9 = vadd.f32 1e-05, %v1837_v60 }
 0x3f6   :  { %v1824_v0 = vmul.f32 0.03125, %v1799_v43  ;;  %v1838_v37 = vsub.f32 %v1828_v28, %v1833_v18 }
 0x3f7   :  { %2671 = vrsqrt.f32 %v1847_v9  ;;  %v2668_v17 = vpop.eup %2667 }
 0x3f8   :  { %v1819_v32 = vpop.xlane.xlu0 %1818  ;;  %v1834_v26 = vmul.f32 %v1824_v0, %v1824_v0  ;;  %v1848_v6 = vadd.f32 1e-05, %v1838_v37  ;;  %v1855_v13 = vmul.f32 %v2668_v17, %v1840_v59  ;;  %v1844_v47 = vsub.f32 %v3831_v35, %v1824_v0  ;;  %v2376_v35 = vld [vmem:[%s3978_s16] ss:$0 sm:$0xff] }
 0x3f9   :  { %v1829_v15 = vmul.f32 0.03125, %v1819_v32 }
 0x3fa   :  { %2673 = vrsqrt.f32 %v1848_v6  ;;  %v1866_v20 = vmul.f32 %v2374_v11, %v1855_v13 }
 0x3fb   :  { %v1839_v38 = vsub.f32 %v1829_v15, %v1834_v26 }
 0x3fc   :  { %v2670_v25 = vpop.eup %2669  ;;  %v1877_v19 = vadd.f32 %v2375_v5, %v1866_v20 }
 0x3fd   :  { %v1849_v62 = vadd.f32 1e-05, %v1839_v38  ;;  %v1856_v3 = vmul.f32 %v2670_v25, %v1841_v30 }
 0x3ff   :  { %2675 = vrsqrt.f32 %v1849_v62  ;;  %v1867_v63 = vmul.f32 %v2374_v11, %v1856_v3 }
 0x401   :  { %v1878_v2 = vadd.f32 %v2375_v5, %v1867_v63 }
 0x403   :  { %v1882_v40 = vpack.c.bf16 %v1878_v2, %v1877_v19 }
 0x404   :  { %v2672_v4 = vpop.eup %2671 }
 0x405   :  { %2566 = vmatmul.mubr.msk.bf16.vlgmr.msra.gmra.mxu0 %vm157_vm0, %v1882_v40  ;;  %v1857_v33 = vmul.f32 %v2672_v4, %v1842_v12 }
 0x406   :  { %2569 = vmatprep.mubr.msk.bf16.mxu0 %vm2678_vm1, %v4018_v56 }
 0x407   :  { %v2674_v22 = vpop.eup %2673  ;;  %v1868_v8 = vmul.f32 %v2374_v11, %v1857_v33 }
 0x408   :  { %v1858_v21 = vmul.f32 %v2674_v22, %v1843_v61 }
 0x409   :  { %v1879_v45 = vadd.f32 %v2375_v5, %v1868_v8 }
 0x40a   :  { %v1869_v34 = vmul.f32 %v2374_v11, %v1858_v21 }
 0x40c   :  { %v2676_v51 = vpop.eup %2675  ;;  %v1880_v42 = vadd.f32 %v2375_v5, %v1869_v34 }
 0x40d   :  { %v1859_v14 = vmul.f32 %v2676_v51, %v1844_v47 }
 0x40e   :  { %v1883_v36 = vpack.c.bf16 %v1880_v42, %v1879_v45 }
 0x40f   :  { %v1870_v31 = vmul.f32 %v2374_v11, %v1859_v14 }
 0x410   :  { %2570 = vmatmul.mubr.msk.bf16.gmra.mxu0 %vm157_vm0, %v1883_v36 }
 0x411   :  { %2573 = vmatprep.mubr.msk.bf16.mxu0 %vm2678_vm1, %v4018_v56  ;;  %v1881_v16 = vadd.f32 %v2375_v5, %v1870_v31 }
 0x413   :  { %v1884_v27 = vpack.c.bf16 %v1881_v16, %v1881_v16 }
 0x418   :  { %2574 = vmatmul.mubr.msk.bf16.gmra.mxu0 %vm157_vm0, %v1884_v27 }
 0x4c5   :  { %v1946_v10 = vpop.f32.mrf.mxu0 }
 0x4c6   :  { %v1947_v24 = vadd.f32 %v2376_v35, %v1946_v10 }
 0x4c7   :  { %v2567_v48 = vpop.f32.mrf.mxu0 }
 0x4c8   :  { %1968 = vst [vmem:[%s3979_s17] sm:$0xff] %v1947_v24 }
 0x4c9   :  { %v1949_v58 = vpop.f32.mrf.mxu0 }
 0x4ca   :  { %v1950_v53 = vadd.f32 %v2376_v35, %v1949_v58 }
 0x4cb   :  { %v2568_v7 = vpop.f32.mrf.mxu0 }
 0x4cc   :  { %1969 = vst [vmem:[%s3979_s17 + $0x8] sm:$0xff] %v1950_v53 }
 0x4d0   :  { %v1954_v56 = vpop.f32.mrf.mxu0 }
 0x4d1   :  { %v1955_v39 = vadd.f32 %v2376_v35, %v1954_v56 }
 0x4d2   :  { %v2571_v23 = vpop.f32.mrf.mxu0 }
 0x4d3   :  { %1970 = vst [vmem:[%s3979_s17 + $0x10] sm:$0xff] %v1955_v39 }
 0x4d4   :  { %v1957_v49 = vpop.f32.mrf.mxu0 }
 0x4d5   :  { %v1958_v52 = vadd.f32 %v2376_v35, %v1957_v49 }
 0x4d6   :  { %v2572_v41 = vpop.f32.mrf.mxu0 }
 0x4d7   :  { %1971 = vst [vmem:[%s3979_s17 + $0x18] sm:$0xff] %v1958_v52 }
 0x4d8   :  { %v1962_v44 = vpop.f32.mrf.mxu0 }
 0x4d9   :  { %v1963_v46 = vadd.f32 %v2376_v35, %v1962_v44 }
 0x4da   :  { %v2575_v1 = vpop.f32.mrf.mxu0 }
 0x4db   :  { %1972 = vst [vmem:[%s3979_s17 + $0x20] sm:$0xff] %v1963_v46 }
 0x4dc   :  { %v1965_v54 = vpop.f32.mrf.mxu0 }
 0x4de   :  { %v2576_v55 = vpop.f32.mrf.mxu0 }

</bundles_post_ra>
